<compile_context>
chip_gen: v7x
topology: tpu7x:2x2x1
jax: 0.10.0
libtpu: 0.0.40
codegen_flags: <defaults>
</compile_context>

<pallas_src>
import math

import jax
import jax.numpy as jnp
from jax.experimental import pallas as pl
from jax.experimental.pallas import tpu as pltpu

# ----------------------------- problem sizes --------------------------------
B = 2      # batch
S = 8      # sequence length
H = 32     # hidden size
F = 128    # FFN intermediate size
V = 64     # vocab size
C = 2      # number of classes (verbalizer label words)

VERB_IDS = (5, 7)   # verbalizer label-word token ids (class 0 <- 5, class 1 <- 7)
LANES = 128         # lane width of the packed parameter slab

# -------------------- packed parameter slab layout (static) ------------------
_PACK_SHAPES = (
    ("word_emb", (V, H)),
    ("type_emb", (2, H)),
    ("pos_emb", (S, H)),
    ("g0", (1, H)), ("be0", (1, H)),
    ("wqkv", (H, 3 * H)), ("bqkv", (1, 3 * H)),
    ("wo", (H, H)), ("bo", (1, H)),
    ("g1", (1, H)), ("be1", (1, H)),
    ("w1", (H, F)), ("b1", (1, F)),
    ("w2", (F, H)), ("b2", (1, H)),
    ("g2", (1, H)), ("be2", (1, H)),
    ("wd", (H, V)), ("bd", (1, V)),
)


def _make_layout():
    layout = {}
    off = 0
    for name, (r, c) in _PACK_SHAPES:
        layout[name] = (off, r, c)          # 8-sublane-aligned row offsets, lane offset 0
        off += -(-r // 8) * 8
    return layout, off


_LAYOUT, _SLAB_ROWS = _make_layout()


def pack_params(p):
    """Pack all parameters into one lane-dense [_SLAB_ROWS, 128] f32 slab (done once)."""
    packed = dict(p)
    packed["wqkv"] = jnp.concatenate([p["wq"], p["wk"], p["wv"]], axis=1)
    packed["bqkv"] = jnp.concatenate([p["bq"], p["bk"], p["bv"]], axis=1)
    slab = jnp.zeros((_SLAB_ROWS, LANES), jnp.float32)
    for name, (off, r, c) in _LAYOUT.items():
        slab = slab.at[off:off + r, :c].set(packed[name].astype(jnp.float32))
    return slab


# ------------------------------ shared math ----------------------------------
def _layernorm(h, g, b, eps=1e-12):
    mu = jnp.mean(h, axis=-1, keepdims=True)
    var = jnp.mean((h - mu) ** 2, axis=-1, keepdims=True)
    return (h - mu) * jax.lax.rsqrt(var + eps) * g + b


# ------------------------------ Pallas kernel --------------------------------
def _prompt_idrc_kernel(ids_ref, tt_ref, mask_ref, lid_ref, label_ref, slab_ref,
                        loss_ref, probs_ref):
    f32 = jnp.float32

    def param(name):
        off, r, c = _LAYOUT[name]
        return slab_ref[off:off + r, :c]

    # ---- embedding gather (token / type ids come from SMEM) -----------------
    w_off = _LAYOUT["word_emb"][0]
    t_off = _LAYOUT["type_emb"][0]
    p_off = _LAYOUT["pos_emb"][0]
    rows = []
    for b in range(B):
        for s in range(S):
            wid = ids_ref[b, s]
            tid = tt_ref[b, s]
            rows.append(slab_ref[pl.ds(w_off + wid, 1), :]
                        + slab_ref[pl.ds(t_off + tid, 1), :])
    x = jnp.concatenate(rows, axis=0)                        # (B*S, 128)
    pos = slab_ref[p_off:p_off + S, :]                       # (S, 128)
    x = (x + jnp.tile(pos, (B, 1)))[:, :H]                   # (B*S, H)  (pad lanes are 0)

    # ---- embedding LayerNorm --------------------------------------------------
    h = _layernorm(x, param("g0"), param("be0"))

    # ---- fused QKV projection: one [B*S,H] x [H,3H] MXU pass ------------------
    qkv = jnp.dot(h, param("wqkv"), preferred_element_type=f32) + param("bqkv")
    q = qkv[:, 0:H]
    k = qkv[:, H:2 * H]
    v = qkv[:, 2 * H:3 * H]

    # ---- single-head self attention (per-batch, B static) --------------------
    mask_f = mask_ref[...].astype(f32)                       # (B, S)
    scale = 1.0 / math.sqrt(H)
    ctx_rows = []
    for b in range(B):
        qb = q[b * S:(b + 1) * S, :]
        kb = k[b * S:(b + 1) * S, :]
        vb = v[b * S:(b + 1) * S, :]
        sc = jax.lax.dot_general(qb, kb, (((1,), (1,)), ((), ())),
                                 preferred_element_type=f32) * scale      # (S, S)
        sc = sc + (1.0 - mask_f[b:b + 1, :]) * (-1e9)
        sc = sc - jnp.max(sc, axis=-1, keepdims=True)
        e = jnp.exp(sc)
        attn = e * pl.reciprocal(jnp.sum(e, axis=-1, keepdims=True), approx=True)
        ctx_rows.append(jnp.dot(attn, vb, preferred_element_type=f32))    # (S, H)
    ctx = jnp.concatenate(ctx_rows, axis=0)                               # (B*S, H)

    attn_out = jnp.dot(ctx, param("wo"), preferred_element_type=f32) + param("bo")
    h = _layernorm(h + attn_out, param("g1"), param("be1"))

    # ---- feed-forward ---------------------------------------------------------
    ff = jnp.dot(h, param("w1"), preferred_element_type=f32) + param("b1")
    ff = jax.nn.gelu(ff, approximate=True)
    ff = jnp.dot(ff, param("w2"), preferred_element_type=f32) + param("b2")
    h = _layernorm(h + ff, param("g2"), param("be2"))

    # ---- gather [MASK] hidden state (template loss_ids) -----------------------
    lid_f = lid_ref[...].astype(f32)                         # (B, S)
    mh_rows = []
    for b in range(B):
        hb = h[b * S:(b + 1) * S, :]                         # (S, H)
        mh_rows.append(jnp.dot(lid_f[b:b + 1, :], hb, preferred_element_type=f32))
    mask_hidden = jnp.concatenate(mh_rows, axis=0)           # (B, H)

    # ---- MLM head + verbalizer (direct label-word column select) -------------
    vocab_logits = (jnp.dot(mask_hidden, param("wd"), preferred_element_type=f32)
                    + param("bd"))                           # (B, V)
    class_logits = jnp.concatenate(
        [vocab_logits[:, i:i + 1] for i in VERB_IDS], axis=-1)            # (B, C)

    # ---- softmax(logits, -1) ---------------------------------------------------
    zmax = jnp.max(class_logits, axis=-1, keepdims=True)
    ez = jnp.exp(class_logits - zmax)
    denom = jnp.sum(ez, axis=-1, keepdims=True)
    probs = ez * pl.reciprocal(denom, approx=True)

    # ---- cross entropy vs argmax(label, -1), mean reduction --------------------
    label_f = label_ref[...].astype(f32)
    iota_c = jax.lax.broadcasted_iota(jnp.int32, (B, C), 1)
    lmax = jnp.max(label_f, axis=-1, keepdims=True)
    first_idx = jnp.min(jnp.where(label_f >= lmax, iota_c, C), axis=-1, keepdims=True)
    onehot = (iota_c == first_idx).astype(f32)
    lse = zmax + jnp.log(denom)                                       # (B, 1)
    picked = jnp.sum(onehot * class_logits, axis=-1, keepdims=True)   # (B, 1)
    loss_ref[0, 0] = jnp.mean(lse - picked)

    # lane-dense output slab: probs padded to 128 lanes (caller slices [:, :C])
    probs_ref[...] = jnp.concatenate(
        [probs, jnp.zeros((B, LANES - C), f32)], axis=-1)


# ------------------------------- wrapper --------------------------------------
@jax.jit
def prompt_idrc_forward(input_ids, attention_mask, token_type_ids, loss_ids, label, slab):
    smem = pl.BlockSpec(memory_space=pltpu.MemorySpace.SMEM)
    vmem = pl.BlockSpec(memory_space=pltpu.MemorySpace.VMEM)
    loss, probs_pad = pl.pallas_call(
        _prompt_idrc_kernel,
        out_shape=(
            jax.ShapeDtypeStruct((1, 1), jnp.float32),        # loss (SMEM scalar)
            jax.ShapeDtypeStruct((B, LANES), jnp.float32),    # padded probs (lane dense)
        ),
        in_specs=[smem, smem, vmem, vmem, vmem, vmem],
        out_specs=(smem, vmem),
    )(input_ids, token_type_ids, attention_mask, loss_ids, label, slab)
    return loss[0, 0], probs_pad[:, :C]


# ---------------------------- parameter init ----------------------------------
def _init_params(key):
    def nrm(k, shape, scale=0.02):
        return (jax.random.normal(k, shape, jnp.float32) * scale).astype(jnp.float32)

    keys = jax.random.split(key, 16)
    p = {}
    p["word_emb"] = nrm(keys[0], (V, H))
    p["type_emb"] = nrm(keys[1], (2, H))
    p["pos_emb"] = nrm(keys[2], (S, H))
    p["g0"], p["be0"] = jnp.ones((1, H), jnp.float32), jnp.zeros((1, H), jnp.float32)
    p["wq"], p["bq"] = nrm(keys[3], (H, H)), jnp.zeros((1, H), jnp.float32)
    p["wk"], p["bk"] = nrm(keys[4], (H, H)), jnp.zeros((1, H), jnp.float32)
    p["wv"], p["bv"] = nrm(keys[5], (H, H)), jnp.zeros((1, H), jnp.float32)
    p["wo"], p["bo"] = nrm(keys[6], (H, H)), jnp.zeros((1, H), jnp.float32)
    p["g1"], p["be1"] = jnp.ones((1, H), jnp.float32), jnp.zeros((1, H), jnp.float32)
    p["w1"], p["b1"] = nrm(keys[7], (H, F)), jnp.zeros((1, F), jnp.float32)
    p["w2"], p["b2"] = nrm(keys[8], (F, H)), jnp.zeros((1, H), jnp.float32)
    p["g2"], p["be2"] = jnp.ones((1, H), jnp.float32), jnp.zeros((1, H), jnp.float32)
    # MLM decoder tied to word embedding (transpose) + bias
    p["wd"] = p["word_emb"].T
    p["bd"] = jnp.zeros((1, V), jnp.float32)
    # one-hot verbalizer matrix (only used by the pure-JAX reference)
    mverb = jnp.zeros((V, C), jnp.float32)
    for c, vid in enumerate(VERB_IDS):
        mverb = mverb.at[vid, c].set(1.0)
    p["mverb"] = mverb
    return p


# -------------------------- pure-JAX reference --------------------------------
def _reference_forward(input_ids, attention_mask, token_type_ids, loss_ids, label, p):
    f32 = jnp.float32
    x = (p["word_emb"][input_ids] + p["type_emb"][token_type_ids]
         + p["pos_emb"][None, :, :]).astype(f32)
    mask_f = attention_mask.astype(f32)
    lid_f = loss_ids.astype(f32)
    label_f = label.astype(f32)

    h = _layernorm(x, p["g0"], p["be0"])
    q = jnp.einsum("bsh,hk->bsk", h, p["wq"]) + p["bq"]
    k = jnp.einsum("bsh,hk->bsk", h, p["wk"]) + p["bk"]
    v = jnp.einsum("bsh,hk->bsk", h, p["wv"]) + p["bv"]
    scale = 1.0 / jnp.sqrt(jnp.asarray(H, f32))
    scores = jnp.einsum("bqh,bkh->bqk", q, k) * scale
    scores = scores + (1.0 - mask_f)[:, None, :] * (-1e9)
    scores = scores - jnp.max(scores, axis=-1, keepdims=True)
    e = jnp.exp(scores)
    attn = e / jnp.sum(e, axis=-1, keepdims=True)
    ctx = jnp.einsum("bqk,bkh->bqh", attn, v)
    attn_out = jnp.einsum("bqh,ho->bqo", ctx, p["wo"]) + p["bo"]
    h = _layernorm(h + attn_out, p["g1"], p["be1"])

    ff = jnp.einsum("bsh,hf->bsf", h, p["w1"]) + p["b1"]
    ff = jax.nn.gelu(ff, approximate=True)
    ff = jnp.einsum("bsf,fh->bsh", ff, p["w2"]) + p["b2"]
    h = _layernorm(h + ff, p["g2"], p["be2"])

    mask_hidden = jnp.einsum("bs,bsh->bh", lid_f, h)
    vocab_logits = jnp.dot(mask_hidden, p["wd"]) + p["bd"]
    class_logits = jnp.dot(vocab_logits, p["mverb"])

    probs = jax.nn.softmax(class_logits, axis=-1)
    targets = jnp.argmax(label_f, axis=-1)
    logz = jax.scipy.special.logsumexp(class_logits, axis=-1)
    picked = jnp.take_along_axis(class_logits, targets[:, None], axis=-1)[:, 0]
    loss = jnp.mean(logz - picked)
    return loss, probs


if __name__ == "__main__":
    key = jax.random.PRNGKey(0)
    k_param, k_ids, k_type, k_label = jax.random.split(key, 4)

    params = _init_params(k_param)
    slab = pack_params(params)   # packed once, outside the jitted forward

    input_ids = jax.random.randint(k_ids, (B, S), 0, V, dtype=jnp.int32)
    token_type_ids = jax.random.randint(k_type, (B, S), 0, 2, dtype=jnp.int32)
    attention_mask = jnp.ones((B, S), jnp.int32).at[:, -2:].set(0)   # last 2 tokens padded
    loss_ids = jnp.zeros((B, S), jnp.int32).at[:, 3].set(1)          # [MASK] at position 3
    label = jax.random.uniform(k_label, (B, C), jnp.float32)         # soft labels -> argmax

    loss, probs = prompt_idrc_forward(
        input_ids, attention_mask, token_type_ids, loss_ids, label, slab
    )
    jax.block_until_ready((loss, probs))

    # pure-JAX reference (original unfused math, exact division) sanity check;
    # tolerance allows for the EUP approximate reciprocal used in the kernel softmaxes.
    ref_loss, ref_probs = _reference_forward(
        input_ids, attention_mask, token_type_ids, loss_ids, label, params
    )
    assert jnp.allclose(loss, ref_loss, rtol=1e-2, atol=1e-3), (loss, ref_loss)
    assert jnp.allclose(probs, ref_probs, rtol=1e-2, atol=1e-3), (probs, ref_probs)

    print("KERNEL_OK")
</pallas_src>

<mosaic_0001>
module attributes {stable_mosaic.version = 11 : i64} {
  func.func @_prompt_idrc_kernel(%arg0: memref<2x8xi32, #tpu.memory_space<smem>>, %arg1: memref<2x8xi32, #tpu.memory_space<smem>>, %arg2: memref<2x8xi32, #tpu.memory_space<vmem>>, %arg3: memref<2x8xi32, #tpu.memory_space<vmem>>, %arg4: memref<2x2xf32, #tpu.memory_space<vmem>>, %arg5: memref<424x128xf32, #tpu.memory_space<vmem>>, %arg6: memref<1x1xf32, #tpu.memory_space<smem>>, %arg7: memref<2x128xf32, #tpu.memory_space<vmem>>) attributes {dimension_semantics = [], scalar_prefetch = 0 : i64, scratch_operands = 0 : i64, tpu.core_type = #tpu.core_type<tc>} {
    %c0 = arith.constant 0 : index
    %c0_0 = arith.constant 0 : index
    %0 = memref.load %arg0[%c0, %c0_0] : memref<2x8xi32, #tpu.memory_space<smem>>
    %c0_1 = arith.constant 0 : index
    %c0_2 = arith.constant 0 : index
    %1 = memref.load %arg1[%c0_1, %c0_2] : memref<2x8xi32, #tpu.memory_space<smem>>
    %c0_i32 = arith.constant 0 : i32
    %2 = arith.addi %c0_i32, %0 : i32
    %3 = arith.index_cast %2 : i32 to index
    %c0_3 = arith.constant 0 : index
    %4 = vector.load %arg5[%3, %c0_3] : memref<424x128xf32, #tpu.memory_space<vmem>>, vector<1x128xf32>
    %c64_i32 = arith.constant 64 : i32
    %5 = arith.addi %c64_i32, %1 : i32
    %6 = arith.index_cast %5 : i32 to index
    %c0_4 = arith.constant 0 : index
    %7 = vector.load %arg5[%6, %c0_4] : memref<424x128xf32, #tpu.memory_space<vmem>>, vector<1x128xf32>
    %8 = arith.addf %4, %7 : vector<1x128xf32>
    %c0_5 = arith.constant 0 : index
    %c1 = arith.constant 1 : index
    %9 = memref.load %arg0[%c0_5, %c1] : memref<2x8xi32, #tpu.memory_space<smem>>
    %c0_6 = arith.constant 0 : index
    %c1_7 = arith.constant 1 : index
    %10 = memref.load %arg1[%c0_6, %c1_7] : memref<2x8xi32, #tpu.memory_space<smem>>
    %c0_i32_8 = arith.constant 0 : i32
    %11 = arith.addi %c0_i32_8, %9 : i32
    %12 = arith.index_cast %11 : i32 to index
    %c0_9 = arith.constant 0 : index
    %13 = vector.load %arg5[%12, %c0_9] : memref<424x128xf32, #tpu.memory_space<vmem>>, vector<1x128xf32>
    %c64_i32_10 = arith.constant 64 : i32
    %14 = arith.addi %c64_i32_10, %10 : i32
    %15 = arith.index_cast %14 : i32 to index
    %c0_11 = arith.constant 0 : index
    %16 = vector.load %arg5[%15, %c0_11] : memref<424x128xf32, #tpu.memory_space<vmem>>, vector<1x128xf32>
    %17 = arith.addf %13, %16 : vector<1x128xf32>
    %c0_12 = arith.constant 0 : index
    %c2 = arith.constant 2 : index
    %18 = memref.load %arg0[%c0_12, %c2] : memref<2x8xi32, #tpu.memory_space<smem>>
    %c0_13 = arith.constant 0 : index
    %c2_14 = arith.constant 2 : index
    %19 = memref.load %arg1[%c0_13, %c2_14] : memref<2x8xi32, #tpu.memory_space<smem>>
    %c0_i32_15 = arith.constant 0 : i32
    %20 = arith.addi %c0_i32_15, %18 : i32
    %21 = arith.index_cast %20 : i32 to index
    %c0_16 = arith.constant 0 : index
    %22 = vector.load %arg5[%21, %c0_16] : memref<424x128xf32, #tpu.memory_space<vmem>>, vector<1x128xf32>
    %c64_i32_17 = arith.constant 64 : i32
    %23 = arith.addi %c64_i32_17, %19 : i32
    %24 = arith.index_cast %23 : i32 to index
    %c0_18 = arith.constant 0 : index
    %25 = vector.load %arg5[%24, %c0_18] : memref<424x128xf32, #tpu.memory_space<vmem>>, vector<1x128xf32>
    %26 = arith.addf %22, %25 : vector<1x128xf32>
    %c0_19 = arith.constant 0 : index
    %c3 = arith.constant 3 : index
    %27 = memref.load %arg0[%c0_19, %c3] : memref<2x8xi32, #tpu.memory_space<smem>>
    %c0_20 = arith.constant 0 : index
    %c3_21 = arith.constant 3 : index
    %28 = memref.load %arg1[%c0_20, %c3_21] : memref<2x8xi32, #tpu.memory_space<smem>>
    %c0_i32_22 = arith.constant 0 : i32
    %29 = arith.addi %c0_i32_22, %27 : i32
    %30 = arith.index_cast %29 : i32 to index
    %c0_23 = arith.constant 0 : index
    %31 = vector.load %arg5[%30, %c0_23] : memref<424x128xf32, #tpu.memory_space<vmem>>, vector<1x128xf32>
    %c64_i32_24 = arith.constant 64 : i32
    %32 = arith.addi %c64_i32_24, %28 : i32
    %33 = arith.index_cast %32 : i32 to index
    %c0_25 = arith.constant 0 : index
    %34 = vector.load %arg5[%33, %c0_25] : memref<424x128xf32, #tpu.memory_space<vmem>>, vector<1x128xf32>
    %35 = arith.addf %31, %34 : vector<1x128xf32>
    %c0_26 = arith.constant 0 : index
    %c4 = arith.constant 4 : index
    %36 = memref.load %arg0[%c0_26, %c4] : memref<2x8xi32, #tpu.memory_space<smem>>
    %c0_27 = arith.constant 0 : index
    %c4_28 = arith.constant 4 : index
    %37 = memref.load %arg1[%c0_27, %c4_28] : memref<2x8xi32, #tpu.memory_space<smem>>
    %c0_i32_29 = arith.constant 0 : i32
    %38 = arith.addi %c0_i32_29, %36 : i32
    %39 = arith.index_cast %38 : i32 to index
    %c0_30 = arith.constant 0 : index
    %40 = vector.load %arg5[%39, %c0_30] : memref<424x128xf32, #tpu.memory_space<vmem>>, vector<1x128xf32>
    %c64_i32_31 = arith.constant 64 : i32
    %41 = arith.addi %c64_i32_31, %37 : i32
    %42 = arith.index_cast %41 : i32 to index
    %c0_32 = arith.constant 0 : index
    %43 = vector.load %arg5[%42, %c0_32] : memref<424x128xf32, #tpu.memory_space<vmem>>, vector<1x128xf32>
    %44 = arith.addf %40, %43 : vector<1x128xf32>
    %c0_33 = arith.constant 0 : index
    %c5 = arith.constant 5 : index
    %45 = memref.load %arg0[%c0_33, %c5] : memref<2x8xi32, #tpu.memory_space<smem>>
    %c0_34 = arith.constant 0 : index
    %c5_35 = arith.constant 5 : index
    %46 = memref.load %arg1[%c0_34, %c5_35] : memref<2x8xi32, #tpu.memory_space<smem>>
    %c0_i32_36 = arith.constant 0 : i32
    %47 = arith.addi %c0_i32_36, %45 : i32
    %48 = arith.index_cast %47 : i32 to index
    %c0_37 = arith.constant 0 : index
    %49 = vector.load %arg5[%48, %c0_37] : memref<424x128xf32, #tpu.memory_space<vmem>>, vector<1x128xf32>
    %c64_i32_38 = arith.constant 64 : i32
    %50 = arith.addi %c64_i32_38, %46 : i32
    %51 = arith.index_cast %50 : i32 to index
    %c0_39 = arith.constant 0 : index
    %52 = vector.load %arg5[%51, %c0_39] : memref<424x128xf32, #tpu.memory_space<vmem>>, vector<1x128xf32>
    %53 = arith.addf %49, %52 : vector<1x128xf32>
    %c0_40 = arith.constant 0 : index
    %c6 = arith.constant 6 : index
    %54 = memref.load %arg0[%c0_40, %c6] : memref<2x8xi32, #tpu.memory_space<smem>>
    %c0_41 = arith.constant 0 : index
    %c6_42 = arith.constant 6 : index
    %55 = memref.load %arg1[%c0_41, %c6_42] : memref<2x8xi32, #tpu.memory_space<smem>>
    %c0_i32_43 = arith.constant 0 : i32
    %56 = arith.addi %c0_i32_43, %54 : i32
    %57 = arith.index_cast %56 : i32 to index
    %c0_44 = arith.constant 0 : index
    %58 = vector.load %arg5[%57, %c0_44] : memref<424x128xf32, #tpu.memory_space<vmem>>, vector<1x128xf32>
    %c64_i32_45 = arith.constant 64 : i32
    %59 = arith.addi %c64_i32_45, %55 : i32
    %60 = arith.index_cast %59 : i32 to index
    %c0_46 = arith.constant 0 : index
    %61 = vector.load %arg5[%60, %c0_46] : memref<424x128xf32, #tpu.memory_space<vmem>>, vector<1x128xf32>
    %62 = arith.addf %58, %61 : vector<1x128xf32>
    %c0_47 = arith.constant 0 : index
    %c7 = arith.constant 7 : index
    %63 = memref.load %arg0[%c0_47, %c7] : memref<2x8xi32, #tpu.memory_space<smem>>
    %c0_48 = arith.constant 0 : index
    %c7_49 = arith.constant 7 : index
    %64 = memref.load %arg1[%c0_48, %c7_49] : memref<2x8xi32, #tpu.memory_space<smem>>
    %c0_i32_50 = arith.constant 0 : i32
    %65 = arith.addi %c0_i32_50, %63 : i32
    %66 = arith.index_cast %65 : i32 to index
    %c0_51 = arith.constant 0 : index
    %67 = vector.load %arg5[%66, %c0_51] : memref<424x128xf32, #tpu.memory_space<vmem>>, vector<1x128xf32>
    %c64_i32_52 = arith.constant 64 : i32
    %68 = arith.addi %c64_i32_52, %64 : i32
    %69 = arith.index_cast %68 : i32 to index
    %c0_53 = arith.constant 0 : index
    %70 = vector.load %arg5[%69, %c0_53] : memref<424x128xf32, #tpu.memory_space<vmem>>, vector<1x128xf32>
    %71 = arith.addf %67, %70 : vector<1x128xf32>
    %c1_54 = arith.constant 1 : index
    %c0_55 = arith.constant 0 : index
    %72 = memref.load %arg0[%c1_54, %c0_55] : memref<2x8xi32, #tpu.memory_space<smem>>
    %c1_56 = arith.constant 1 : index
    %c0_57 = arith.constant 0 : index
    %73 = memref.load %arg1[%c1_56, %c0_57] : memref<2x8xi32, #tpu.memory_space<smem>>
    %c0_i32_58 = arith.constant 0 : i32
    %74 = arith.addi %c0_i32_58, %72 : i32
    %75 = arith.index_cast %74 : i32 to index
    %c0_59 = arith.constant 0 : index
    %76 = vector.load %arg5[%75, %c0_59] : memref<424x128xf32, #tpu.memory_space<vmem>>, vector<1x128xf32>
    %c64_i32_60 = arith.constant 64 : i32
    %77 = arith.addi %c64_i32_60, %73 : i32
    %78 = arith.index_cast %77 : i32 to index
    %c0_61 = arith.constant 0 : index
    %79 = vector.load %arg5[%78, %c0_61] : memref<424x128xf32, #tpu.memory_space<vmem>>, vector<1x128xf32>
    %80 = arith.addf %76, %79 : vector<1x128xf32>
    %c1_62 = arith.constant 1 : index
    %c1_63 = arith.constant 1 : index
    %81 = memref.load %arg0[%c1_62, %c1_63] : memref<2x8xi32, #tpu.memory_space<smem>>
    %c1_64 = arith.constant 1 : index
    %c1_65 = arith.constant 1 : index
    %82 = memref.load %arg1[%c1_64, %c1_65] : memref<2x8xi32, #tpu.memory_space<smem>>
    %c0_i32_66 = arith.constant 0 : i32
    %83 = arith.addi %c0_i32_66, %81 : i32
    %84 = arith.index_cast %83 : i32 to index
    %c0_67 = arith.constant 0 : index
    %85 = vector.load %arg5[%84, %c0_67] : memref<424x128xf32, #tpu.memory_space<vmem>>, vector<1x128xf32>
    %c64_i32_68 = arith.constant 64 : i32
    %86 = arith.addi %c64_i32_68, %82 : i32
    %87 = arith.index_cast %86 : i32 to index
    %c0_69 = arith.constant 0 : index
    %88 = vector.load %arg5[%87, %c0_69] : memref<424x128xf32, #tpu.memory_space<vmem>>, vector<1x128xf32>
    %89 = arith.addf %85, %88 : vector<1x128xf32>
    %c1_70 = arith.constant 1 : index
    %c2_71 = arith.constant 2 : index
    %90 = memref.load %arg0[%c1_70, %c2_71] : memref<2x8xi32, #tpu.memory_space<smem>>
    %c1_72 = arith.constant 1 : index
    %c2_73 = arith.constant 2 : index
    %91 = memref.load %arg1[%c1_72, %c2_73] : memref<2x8xi32, #tpu.memory_space<smem>>
    %c0_i32_74 = arith.constant 0 : i32
    %92 = arith.addi %c0_i32_74, %90 : i32
    %93 = arith.index_cast %92 : i32 to index
    %c0_75 = arith.constant 0 : index
    %94 = vector.load %arg5[%93, %c0_75] : memref<424x128xf32, #tpu.memory_space<vmem>>, vector<1x128xf32>
    %c64_i32_76 = arith.constant 64 : i32
    %95 = arith.addi %c64_i32_76, %91 : i32
    %96 = arith.index_cast %95 : i32 to index
    %c0_77 = arith.constant 0 : index
    %97 = vector.load %arg5[%96, %c0_77] : memref<424x128xf32, #tpu.memory_space<vmem>>, vector<1x128xf32>
    %98 = arith.addf %94, %97 : vector<1x128xf32>
    %c1_78 = arith.constant 1 : index
    %c3_79 = arith.constant 3 : index
    %99 = memref.load %arg0[%c1_78, %c3_79] : memref<2x8xi32, #tpu.memory_space<smem>>
    %c1_80 = arith.constant 1 : index
    %c3_81 = arith.constant 3 : index
    %100 = memref.load %arg1[%c1_80, %c3_81] : memref<2x8xi32, #tpu.memory_space<smem>>
    %c0_i32_82 = arith.constant 0 : i32
    %101 = arith.addi %c0_i32_82, %99 : i32
    %102 = arith.index_cast %101 : i32 to index
    %c0_83 = arith.constant 0 : index
    %103 = vector.load %arg5[%102, %c0_83] : memref<424x128xf32, #tpu.memory_space<vmem>>, vector<1x128xf32>
    %c64_i32_84 = arith.constant 64 : i32
    %104 = arith.addi %c64_i32_84, %100 : i32
    %105 = arith.index_cast %104 : i32 to index
    %c0_85 = arith.constant 0 : index
    %106 = vector.load %arg5[%105, %c0_85] : memref<424x128xf32, #tpu.memory_space<vmem>>, vector<1x128xf32>
    %107 = arith.addf %103, %106 : vector<1x128xf32>
    %c1_86 = arith.constant 1 : index
    %c4_87 = arith.constant 4 : index
    %108 = memref.load %arg0[%c1_86, %c4_87] : memref<2x8xi32, #tpu.memory_space<smem>>
    %c1_88 = arith.constant 1 : index
    %c4_89 = arith.constant 4 : index
    %109 = memref.load %arg1[%c1_88, %c4_89] : memref<2x8xi32, #tpu.memory_space<smem>>
    %c0_i32_90 = arith.constant 0 : i32
    %110 = arith.addi %c0_i32_90, %108 : i32
    %111 = arith.index_cast %110 : i32 to index
    %c0_91 = arith.constant 0 : index
    %112 = vector.load %arg5[%111, %c0_91] : memref<424x128xf32, #tpu.memory_space<vmem>>, vector<1x128xf32>
    %c64_i32_92 = arith.constant 64 : i32
    %113 = arith.addi %c64_i32_92, %109 : i32
    %114 = arith.index_cast %113 : i32 to index
    %c0_93 = arith.constant 0 : index
    %115 = vector.load %arg5[%114, %c0_93] : memref<424x128xf32, #tpu.memory_space<vmem>>, vector<1x128xf32>
    %116 = arith.addf %112, %115 : vector<1x128xf32>
    %c1_94 = arith.constant 1 : index
    %c5_95 = arith.constant 5 : index
    %117 = memref.load %arg0[%c1_94, %c5_95] : memref<2x8xi32, #tpu.memory_space<smem>>
    %c1_96 = arith.constant 1 : index
    %c5_97 = arith.constant 5 : index
    %118 = memref.load %arg1[%c1_96, %c5_97] : memref<2x8xi32, #tpu.memory_space<smem>>
    %c0_i32_98 = arith.constant 0 : i32
    %119 = arith.addi %c0_i32_98, %117 : i32
    %120 = arith.index_cast %119 : i32 to index
    %c0_99 = arith.constant 0 : index
    %121 = vector.load %arg5[%120, %c0_99] : memref<424x128xf32, #tpu.memory_space<vmem>>, vector<1x128xf32>
    %c64_i32_100 = arith.constant 64 : i32
    %122 = arith.addi %c64_i32_100, %118 : i32
    %123 = arith.index_cast %122 : i32 to index
    %c0_101 = arith.constant 0 : index
    %124 = vector.load %arg5[%123, %c0_101] : memref<424x128xf32, #tpu.memory_space<vmem>>, vector<1x128xf32>
    %125 = arith.addf %121, %124 : vector<1x128xf32>
    %c1_102 = arith.constant 1 : index
    %c6_103 = arith.constant 6 : index
    %126 = memref.load %arg0[%c1_102, %c6_103] : memref<2x8xi32, #tpu.memory_space<smem>>
    %c1_104 = arith.constant 1 : index
    %c6_105 = arith.constant 6 : index
    %127 = memref.load %arg1[%c1_104, %c6_105] : memref<2x8xi32, #tpu.memory_space<smem>>
    %c0_i32_106 = arith.constant 0 : i32
    %128 = arith.addi %c0_i32_106, %126 : i32
    %129 = arith.index_cast %128 : i32 to index
    %c0_107 = arith.constant 0 : index
    %130 = vector.load %arg5[%129, %c0_107] : memref<424x128xf32, #tpu.memory_space<vmem>>, vector<1x128xf32>
    %c64_i32_108 = arith.constant 64 : i32
    %131 = arith.addi %c64_i32_108, %127 : i32
    %132 = arith.index_cast %131 : i32 to index
    %c0_109 = arith.constant 0 : index
    %133 = vector.load %arg5[%132, %c0_109] : memref<424x128xf32, #tpu.memory_space<vmem>>, vector<1x128xf32>
    %134 = arith.addf %130, %133 : vector<1x128xf32>
    %c1_110 = arith.constant 1 : index
    %c7_111 = arith.constant 7 : index
    %135 = memref.load %arg0[%c1_110, %c7_111] : memref<2x8xi32, #tpu.memory_space<smem>>
    %c1_112 = arith.constant 1 : index
    %c7_113 = arith.constant 7 : index
    %136 = memref.load %arg1[%c1_112, %c7_113] : memref<2x8xi32, #tpu.memory_space<smem>>
    %c0_i32_114 = arith.constant 0 : i32
    %137 = arith.addi %c0_i32_114, %135 : i32
    %138 = arith.index_cast %137 : i32 to index
    %c0_115 = arith.constant 0 : index
    %139 = vector.load %arg5[%138, %c0_115] : memref<424x128xf32, #tpu.memory_space<vmem>>, vector<1x128xf32>
    %c64_i32_116 = arith.constant 64 : i32
    %140 = arith.addi %c64_i32_116, %136 : i32
    %141 = arith.index_cast %140 : i32 to index
    %c0_117 = arith.constant 0 : index
    %142 = vector.load %arg5[%141, %c0_117] : memref<424x128xf32, #tpu.memory_space<vmem>>, vector<1x128xf32>
    %143 = arith.addf %139, %142 : vector<1x128xf32>
    %144 = tpu.concatenate %8, %17, %26, %35, %44, %53, %62, %71, %80, %89, %98, %107, %116, %125, %134, %143 in 0 : vector<1x128xf32>, vector<1x128xf32>, vector<1x128xf32>, vector<1x128xf32>, vector<1x128xf32>, vector<1x128xf32>, vector<1x128xf32>, vector<1x128xf32>, vector<1x128xf32>, vector<1x128xf32>, vector<1x128xf32>, vector<1x128xf32>, vector<1x128xf32>, vector<1x128xf32>, vector<1x128xf32>, vector<1x128xf32> -> vector<16x128xf32>
    %c72 = arith.constant 72 : index
    %c0_118 = arith.constant 0 : index
    %145 = vector.load %arg5[%c72, %c0_118] : memref<424x128xf32, #tpu.memory_space<vmem>>, vector<8x128xf32>
    %146 = tpu.concatenate %145, %145 in 0 : vector<8x128xf32>, vector<8x128xf32> -> vector<16x128xf32>
    %147 = arith.addf %144, %146 : vector<16x128xf32>
    %148 = vector.extract_strided_slice %147 {offsets = [0, 0], sizes = [16, 32], strides = [1, 1]} : vector<16x128xf32> to vector<16x32xf32>
    %c80 = arith.constant 80 : index
    %c0_119 = arith.constant 0 : index
    %149 = vector.load %arg5[%c80, %c0_119] : memref<424x128xf32, #tpu.memory_space<vmem>>, vector<1x32xf32>
    %c88 = arith.constant 88 : index
    %c0_120 = arith.constant 0 : index
    %150 = vector.load %arg5[%c88, %c0_120] : memref<424x128xf32, #tpu.memory_space<vmem>>, vector<1x32xf32>
    %cst = arith.constant dense<0.000000e+00> : vector<16xf32>
    %151 = vector.multi_reduction <add>, %148, %cst [1] : vector<16x32xf32> to vector<16xf32>
    %152 = vector.shape_cast %151 : vector<16xf32> to vector<16x1xf32>
    %cst_121 = arith.constant 3.200000e+01 : f32
    %153 = vector.broadcast %cst_121 : f32 to vector<16x1xf32>
    %154 = arith.divf %152, %153 : vector<16x1xf32>
    %155 = vector.broadcast %154 : vector<16x1xf32> to vector<16x32xf32>
    %156 = arith.subf %148, %155 : vector<16x32xf32>
    %157 = arith.mulf %156, %156 : vector<16x32xf32>
    %cst_122 = arith.constant dense<0.000000e+00> : vector<16xf32>
    %158 = vector.multi_reduction <add>, %157, %cst_122 [1] : vector<16x32xf32> to vector<16xf32>
    %159 = vector.shape_cast %158 : vector<16xf32> to vector<16x1xf32>
    %cst_123 = arith.constant 3.200000e+01 : f32
    %160 = vector.broadcast %cst_123 : f32 to vector<16x1xf32>
    %161 = arith.divf %159, %160 : vector<16x1xf32>
    %162 = vector.broadcast %154 : vector<16x1xf32> to vector<16x32xf32>
    %163 = arith.subf %148, %162 : vector<16x32xf32>
    %cst_124 = arith.constant 9.99999996E-13 : f32
    %164 = vector.broadcast %cst_124 : f32 to vector<16x1xf32>
    %165 = arith.addf %161, %164 : vector<16x1xf32>
    %166 = math.rsqrt %165 : vector<16x1xf32>
    %167 = vector.broadcast %166 : vector<16x1xf32> to vector<16x32xf32>
    %168 = arith.mulf %163, %167 : vector<16x32xf32>
    %169 = vector.broadcast %149 : vector<1x32xf32> to vector<16x32xf32>
    %170 = arith.mulf %168, %169 : vector<16x32xf32>
    %171 = vector.broadcast %150 : vector<1x32xf32> to vector<16x32xf32>
    %172 = arith.addf %170, %171 : vector<16x32xf32>
    %c96 = arith.constant 96 : index
    %c0_125 = arith.constant 0 : index
    %173 = vector.load %arg5[%c96, %c0_125] : memref<424x128xf32, #tpu.memory_space<vmem>>, vector<32x96xf32>
    %cst_126 = arith.constant dense<0.000000e+00> : vector<16x96xf32>
    %174 = tpu.matmul %172, %173, %cst_126 {dimension_numbers = #tpu.dot_dimension_numbers<[1], [0], [0], [1], [0, 0, 1, 1], [], []>} : vector<16x32xf32>, vector<32x96xf32>, vector<16x96xf32> -> vector<16x96xf32>
    %c128 = arith.constant 128 : index
    %c0_127 = arith.constant 0 : index
    %175 = vector.load %arg5[%c128, %c0_127] : memref<424x128xf32, #tpu.memory_space<vmem>>, vector<1x96xf32>
    %176 = vector.broadcast %175 : vector<1x96xf32> to vector<16x96xf32>
    %177 = arith.addf %174, %176 : vector<16x96xf32>
    %178 = vector.extract_strided_slice %177 {offsets = [0, 0], sizes = [16, 32], strides = [1, 1]} : vector<16x96xf32> to vector<16x32xf32>
    %179 = vector.extract_strided_slice %177 {offsets = [0, 32], sizes = [16, 32], strides = [1, 1]} : vector<16x96xf32> to vector<16x32xf32>
    %180 = vector.extract_strided_slice %177 {offsets = [0, 64], sizes = [16, 32], strides = [1, 1]} : vector<16x96xf32> to vector<16x32xf32>
    %c0_128 = arith.constant 0 : index
    %c0_129 = arith.constant 0 : index
    %181 = vector.load %arg2[%c0_128, %c0_129] : memref<2x8xi32, #tpu.memory_space<vmem>>, vector<2x8xi32>
    %182 = arith.sitofp %181 : vector<2x8xi32> to vector<2x8xf32>
    %183 = vector.extract_strided_slice %178 {offsets = [0, 0], sizes = [8, 32], strides = [1, 1]} : vector<16x32xf32> to vector<8x32xf32>
    %184 = vector.extract_strided_slice %179 {offsets = [0, 0], sizes = [8, 32], strides = [1, 1]} : vector<16x32xf32> to vector<8x32xf32>
    %185 = vector.extract_strided_slice %180 {offsets = [0, 0], sizes = [8, 32], strides = [1, 1]} : vector<16x32xf32> to vector<8x32xf32>
    %cst_130 = arith.constant dense<0.000000e+00> : vector<8x8xf32>
    %186 = tpu.matmul %183, %184, %cst_130 {dimension_numbers = #tpu.dot_dimension_numbers<[1], [1], [0], [0], [0, 0, 1, 0], [], []>} : vector<8x32xf32>, vector<8x32xf32>, vector<8x8xf32> -> vector<8x8xf32>
    %cst_131 = arith.constant 0.176776692 : f32
    %187 = vector.broadcast %cst_131 : f32 to vector<8x8xf32>
    %188 = arith.mulf %186, %187 : vector<8x8xf32>
    %189 = vector.extract_strided_slice %182 {offsets = [0, 0], sizes = [1, 8], strides = [1, 1]} : vector<2x8xf32> to vector<1x8xf32>
    %cst_132 = arith.constant 1.000000e+00 : f32
    %190 = vector.broadcast %cst_132 : f32 to vector<1x8xf32>
    %191 = arith.subf %190, %189 : vector<1x8xf32>
    %cst_133 = arith.constant -1.000000e+09 : f32
    %192 = vector.broadcast %cst_133 : f32 to vector<1x8xf32>
    %193 = arith.mulf %191, %192 : vector<1x8xf32>
    %194 = vector.broadcast %193 : vector<1x8xf32> to vector<8x8xf32>
    %195 = arith.addf %188, %194 : vector<8x8xf32>
    %cst_134 = arith.constant dense<0xFF800000> : vector<8xf32>
    %196 = vector.multi_reduction <maximumf>, %195, %cst_134 [1] : vector<8x8xf32> to vector<8xf32>
    %197 = vector.shape_cast %196 : vector<8xf32> to vector<8x1xf32>
    %198 = vector.broadcast %197 : vector<8x1xf32> to vector<8x8xf32>
    %199 = arith.subf %195, %198 : vector<8x8xf32>
    %200 = math.exp %199 : vector<8x8xf32>
    %cst_135 = arith.constant dense<0.000000e+00> : vector<8xf32>
    %201 = vector.multi_reduction <add>, %200, %cst_135 [1] : vector<8x8xf32> to vector<8xf32>
    %202 = vector.shape_cast %201 : vector<8xf32> to vector<8x1xf32>
    %203 = tpu.reciprocal %202 {approx = true} : vector<8x1xf32> -> vector<8x1xf32>
    %204 = vector.broadcast %203 : vector<8x1xf32> to vector<8x8xf32>
    %205 = arith.mulf %200, %204 : vector<8x8xf32>
    %cst_136 = arith.constant dense<0.000000e+00> : vector<8x32xf32>
    %206 = tpu.matmul %205, %185, %cst_136 {dimension_numbers = #tpu.dot_dimension_numbers<[1], [0], [0], [1], [0, 0, 1, 1], [], []>} : vector<8x8xf32>, vector<8x32xf32>, vector<8x32xf32> -> vector<8x32xf32>
    %207 = vector.extract_strided_slice %178 {offsets = [8, 0], sizes = [8, 32], strides = [1, 1]} : vector<16x32xf32> to vector<8x32xf32>
    %208 = vector.extract_strided_slice %179 {offsets = [8, 0], sizes = [8, 32], strides = [1, 1]} : vector<16x32xf32> to vector<8x32xf32>
    %209 = vector.extract_strided_slice %180 {offsets = [8, 0], sizes = [8, 32], strides = [1, 1]} : vector<16x32xf32> to vector<8x32xf32>
    %cst_137 = arith.constant dense<0.000000e+00> : vector<8x8xf32>
    %210 = tpu.matmul %207, %208, %cst_137 {dimension_numbers = #tpu.dot_dimension_numbers<[1], [1], [0], [0], [0, 0, 1, 0], [], []>} : vector<8x32xf32>, vector<8x32xf32>, vector<8x8xf32> -> vector<8x8xf32>
    %cst_138 = arith.constant 0.176776692 : f32
    %211 = vector.broadcast %cst_138 : f32 to vector<8x8xf32>
    %212 = arith.mulf %210, %211 : vector<8x8xf32>
    %213 = vector.extract_strided_slice %182 {offsets = [1, 0], sizes = [1, 8], strides = [1, 1]} : vector<2x8xf32> to vector<1x8xf32>
    %cst_139 = arith.constant 1.000000e+00 : f32
    %214 = vector.broadcast %cst_139 : f32 to vector<1x8xf32>
    %215 = arith.subf %214, %213 : vector<1x8xf32>
    %cst_140 = arith.constant -1.000000e+09 : f32
    %216 = vector.broadcast %cst_140 : f32 to vector<1x8xf32>
    %217 = arith.mulf %215, %216 : vector<1x8xf32>
    %218 = vector.broadcast %217 : vector<1x8xf32> to vector<8x8xf32>
    %219 = arith.addf %212, %218 : vector<8x8xf32>
    %cst_141 = arith.constant dense<0xFF800000> : vector<8xf32>
    %220 = vector.multi_reduction <maximumf>, %219, %cst_141 [1] : vector<8x8xf32> to vector<8xf32>
    %221 = vector.shape_cast %220 : vector<8xf32> to vector<8x1xf32>
    %222 = vector.broadcast %221 : vector<8x1xf32> to vector<8x8xf32>
    %223 = arith.subf %219, %222 : vector<8x8xf32>
    %224 = math.exp %223 : vector<8x8xf32>
    %cst_142 = arith.constant dense<0.000000e+00> : vector<8xf32>
    %225 = vector.multi_reduction <add>, %224, %cst_142 [1] : vector<8x8xf32> to vector<8xf32>
    %226 = vector.shape_cast %225 : vector<8xf32> to vector<8x1xf32>
    %227 = tpu.reciprocal %226 {approx = true} : vector<8x1xf32> -> vector<8x1xf32>
    %228 = vector.broadcast %227 : vector<8x1xf32> to vector<8x8xf32>
    %229 = arith.mulf %224, %228 : vector<8x8xf32>
    %cst_143 = arith.constant dense<0.000000e+00> : vector<8x32xf32>
    %230 = tpu.matmul %229, %209, %cst_143 {dimension_numbers = #tpu.dot_dimension_numbers<[1], [0], [0], [1], [0, 0, 1, 1], [], []>} : vector<8x8xf32>, vector<8x32xf32>, vector<8x32xf32> -> vector<8x32xf32>
    %231 = tpu.concatenate %206, %230 in 0 : vector<8x32xf32>, vector<8x32xf32> -> vector<16x32xf32>
    %c136 = arith.constant 136 : index
    %c0_144 = arith.constant 0 : index
    %232 = vector.load %arg5[%c136, %c0_144] : memref<424x128xf32, #tpu.memory_space<vmem>>, vector<32x32xf32>
    %cst_145 = arith.constant dense<0.000000e+00> : vector<16x32xf32>
    %233 = tpu.matmul %231, %232, %cst_145 {dimension_numbers = #tpu.dot_dimension_numbers<[1], [0], [0], [1], [0, 0, 1, 1], [], []>} : vector<16x32xf32>, vector<32x32xf32>, vector<16x32xf32> -> vector<16x32xf32>
    %c168 = arith.constant 168 : index
    %c0_146 = arith.constant 0 : index
    %234 = vector.load %arg5[%c168, %c0_146] : memref<424x128xf32, #tpu.memory_space<vmem>>, vector<1x32xf32>
    %235 = vector.broadcast %234 : vector<1x32xf32> to vector<16x32xf32>
    %236 = arith.addf %233, %235 : vector<16x32xf32>
    %237 = arith.addf %172, %236 : vector<16x32xf32>
    %c176 = arith.constant 176 : index
    %c0_147 = arith.constant 0 : index
    %238 = vector.load %arg5[%c176, %c0_147] : memref<424x128xf32, #tpu.memory_space<vmem>>, vector<1x32xf32>
    %c184 = arith.constant 184 : index
    %c0_148 = arith.constant 0 : index
    %239 = vector.load %arg5[%c184, %c0_148] : memref<424x128xf32, #tpu.memory_space<vmem>>, vector<1x32xf32>
    %cst_149 = arith.constant dense<0.000000e+00> : vector<16xf32>
    %240 = vector.multi_reduction <add>, %237, %cst_149 [1] : vector<16x32xf32> to vector<16xf32>
    %241 = vector.shape_cast %240 : vector<16xf32> to vector<16x1xf32>
    %cst_150 = arith.constant 3.200000e+01 : f32
    %242 = vector.broadcast %cst_150 : f32 to vector<16x1xf32>
    %243 = arith.divf %241, %242 : vector<16x1xf32>
    %244 = vector.broadcast %243 : vector<16x1xf32> to vector<16x32xf32>
    %245 = arith.subf %237, %244 : vector<16x32xf32>
    %246 = arith.mulf %245, %245 : vector<16x32xf32>
    %cst_151 = arith.constant dense<0.000000e+00> : vector<16xf32>
    %247 = vector.multi_reduction <add>, %246, %cst_151 [1] : vector<16x32xf32> to vector<16xf32>
    %248 = vector.shape_cast %247 : vector<16xf32> to vector<16x1xf32>
    %cst_152 = arith.constant 3.200000e+01 : f32
    %249 = vector.broadcast %cst_152 : f32 to vector<16x1xf32>
    %250 = arith.divf %248, %249 : vector<16x1xf32>
    %251 = vector.broadcast %243 : vector<16x1xf32> to vector<16x32xf32>
    %252 = arith.subf %237, %251 : vector<16x32xf32>
    %cst_153 = arith.constant 9.99999996E-13 : f32
    %253 = vector.broadcast %cst_153 : f32 to vector<16x1xf32>
    %254 = arith.addf %250, %253 : vector<16x1xf32>
    %255 = math.rsqrt %254 : vector<16x1xf32>
    %256 = vector.broadcast %255 : vector<16x1xf32> to vector<16x32xf32>
    %257 = arith.mulf %252, %256 : vector<16x32xf32>
    %258 = vector.broadcast %238 : vector<1x32xf32> to vector<16x32xf32>
    %259 = arith.mulf %257, %258 : vector<16x32xf32>
    %260 = vector.broadcast %239 : vector<1x32xf32> to vector<16x32xf32>
    %261 = arith.addf %259, %260 : vector<16x32xf32>
    %c192 = arith.constant 192 : index
    %c0_154 = arith.constant 0 : index
    %262 = vector.load %arg5[%c192, %c0_154] : memref<424x128xf32, #tpu.memory_space<vmem>>, vector<32x128xf32>
    %cst_155 = arith.constant dense<0.000000e+00> : vector<16x128xf32>
    %263 = tpu.matmul %261, %262, %cst_155 {dimension_numbers = #tpu.dot_dimension_numbers<[1], [0], [0], [1], [0, 0, 1, 1], [], []>} : vector<16x32xf32>, vector<32x128xf32>, vector<16x128xf32> -> vector<16x128xf32>
    %c224 = arith.constant 224 : index
    %c0_156 = arith.constant 0 : index
    %264 = vector.load %arg5[%c224, %c0_156] : memref<424x128xf32, #tpu.memory_space<vmem>>, vector<1x128xf32>
    %265 = vector.broadcast %264 : vector<1x128xf32> to vector<16x128xf32>
    %266 = arith.addf %263, %265 : vector<16x128xf32>
    %267 = arith.mulf %266, %266 : vector<16x128xf32>
    %268 = arith.mulf %266, %267 : vector<16x128xf32>
    %cst_157 = arith.constant 4.471500e-02 : f32
    %269 = vector.broadcast %cst_157 : f32 to vector<16x128xf32>
    %270 = arith.mulf %269, %268 : vector<16x128xf32>
    %271 = arith.addf %266, %270 : vector<16x128xf32>
    %cst_158 = arith.constant 0.797884583 : f32
    %272 = vector.broadcast %cst_158 : f32 to vector<16x128xf32>
    %273 = arith.mulf %272, %271 : vector<16x128xf32>
    %274 = math.tanh %273 : vector<16x128xf32>
    %cst_159 = arith.constant 1.000000e+00 : f32
    %275 = vector.broadcast %cst_159 : f32 to vector<16x128xf32>
    %276 = arith.addf %275, %274 : vector<16x128xf32>
    %cst_160 = arith.constant 5.000000e-01 : f32
    %277 = vector.broadcast %cst_160 : f32 to vector<16x128xf32>
    %278 = arith.mulf %277, %276 : vector<16x128xf32>
    %279 = arith.mulf %266, %278 : vector<16x128xf32>
    %c232 = arith.constant 232 : index
    %c0_161 = arith.constant 0 : index
    %280 = vector.load %arg5[%c232, %c0_161] : memref<424x128xf32, #tpu.memory_space<vmem>>, vector<128x32xf32>
    %cst_162 = arith.constant dense<0.000000e+00> : vector<16x32xf32>
    %281 = tpu.matmul %279, %280, %cst_162 {dimension_numbers = #tpu.dot_dimension_numbers<[1], [0], [0], [1], [0, 0, 1, 1], [], []>} : vector<16x128xf32>, vector<128x32xf32>, vector<16x32xf32> -> vector<16x32xf32>
    %c360 = arith.constant 360 : index
    %c0_163 = arith.constant 0 : index
    %282 = vector.load %arg5[%c360, %c0_163] : memref<424x128xf32, #tpu.memory_space<vmem>>, vector<1x32xf32>
    %283 = vector.broadcast %282 : vector<1x32xf32> to vector<16x32xf32>
    %284 = arith.addf %281, %283 : vector<16x32xf32>
    %285 = arith.addf %261, %284 : vector<16x32xf32>
    %c368 = arith.constant 368 : index
    %c0_164 = arith.constant 0 : index
    %286 = vector.load %arg5[%c368, %c0_164] : memref<424x128xf32, #tpu.memory_space<vmem>>, vector<1x32xf32>
    %c376 = arith.constant 376 : index
    %c0_165 = arith.constant 0 : index
    %287 = vector.load %arg5[%c376, %c0_165] : memref<424x128xf32, #tpu.memory_space<vmem>>, vector<1x32xf32>
    %cst_166 = arith.constant dense<0.000000e+00> : vector<16xf32>
    %288 = vector.multi_reduction <add>, %285, %cst_166 [1] : vector<16x32xf32> to vector<16xf32>
    %289 = vector.shape_cast %288 : vector<16xf32> to vector<16x1xf32>
    %cst_167 = arith.constant 3.200000e+01 : f32
    %290 = vector.broadcast %cst_167 : f32 to vector<16x1xf32>
    %291 = arith.divf %289, %290 : vector<16x1xf32>
    %292 = vector.broadcast %291 : vector<16x1xf32> to vector<16x32xf32>
    %293 = arith.subf %285, %292 : vector<16x32xf32>
    %294 = arith.mulf %293, %293 : vector<16x32xf32>
    %cst_168 = arith.constant dense<0.000000e+00> : vector<16xf32>
    %295 = vector.multi_reduction <add>, %294, %cst_168 [1] : vector<16x32xf32> to vector<16xf32>
    %296 = vector.shape_cast %295 : vector<16xf32> to vector<16x1xf32>
    %cst_169 = arith.constant 3.200000e+01 : f32
    %297 = vector.broadcast %cst_169 : f32 to vector<16x1xf32>
    %298 = arith.divf %296, %297 : vector<16x1xf32>
    %299 = vector.broadcast %291 : vector<16x1xf32> to vector<16x32xf32>
    %300 = arith.subf %285, %299 : vector<16x32xf32>
    %cst_170 = arith.constant 9.99999996E-13 : f32
    %301 = vector.broadcast %cst_170 : f32 to vector<16x1xf32>
    %302 = arith.addf %298, %301 : vector<16x1xf32>
    %303 = math.rsqrt %302 : vector<16x1xf32>
    %304 = vector.broadcast %303 : vector<16x1xf32> to vector<16x32xf32>
    %305 = arith.mulf %300, %304 : vector<16x32xf32>
    %306 = vector.broadcast %286 : vector<1x32xf32> to vector<16x32xf32>
    %307 = arith.mulf %305, %306 : vector<16x32xf32>
    %308 = vector.broadcast %287 : vector<1x32xf32> to vector<16x32xf32>
    %309 = arith.addf %307, %308 : vector<16x32xf32>
    %c0_171 = arith.constant 0 : index
    %c0_172 = arith.constant 0 : index
    %310 = vector.load %arg3[%c0_171, %c0_172] : memref<2x8xi32, #tpu.memory_space<vmem>>, vector<2x8xi32>
    %311 = arith.sitofp %310 : vector<2x8xi32> to vector<2x8xf32>
    %312 = vector.extract_strided_slice %309 {offsets = [0, 0], sizes = [8, 32], strides = [1, 1]} : vector<16x32xf32> to vector<8x32xf32>
    %313 = vector.extract_strided_slice %311 {offsets = [0, 0], sizes = [1, 8], strides = [1, 1]} : vector<2x8xf32> to vector<1x8xf32>
    %cst_173 = arith.constant dense<0.000000e+00> : vector<1x32xf32>
    %314 = tpu.matmul %313, %312, %cst_173 {dimension_numbers = #tpu.dot_dimension_numbers<[1], [0], [0], [1], [0, 0, 1, 1], [], []>} : vector<1x8xf32>, vector<8x32xf32>, vector<1x32xf32> -> vector<1x32xf32>
    %315 = vector.extract_strided_slice %309 {offsets = [8, 0], sizes = [8, 32], strides = [1, 1]} : vector<16x32xf32> to vector<8x32xf32>
    %316 = vector.extract_strided_slice %311 {offsets = [1, 0], sizes = [1, 8], strides = [1, 1]} : vector<2x8xf32> to vector<1x8xf32>
    %cst_174 = arith.constant dense<0.000000e+00> : vector<1x32xf32>
    %317 = tpu.matmul %316, %315, %cst_174 {dimension_numbers = #tpu.dot_dimension_numbers<[1], [0], [0], [1], [0, 0, 1, 1], [], []>} : vector<1x8xf32>, vector<8x32xf32>, vector<1x32xf32> -> vector<1x32xf32>
    %318 = tpu.concatenate %314, %317 in 0 : vector<1x32xf32>, vector<1x32xf32> -> vector<2x32xf32>
    %c384 = arith.constant 384 : index
    %c0_175 = arith.constant 0 : index
    %319 = vector.load %arg5[%c384, %c0_175] : memref<424x128xf32, #tpu.memory_space<vmem>>, vector<32x64xf32>
    %cst_176 = arith.constant dense<0.000000e+00> : vector<2x64xf32>
    %320 = tpu.matmul %318, %319, %cst_176 {dimension_numbers = #tpu.dot_dimension_numbers<[1], [0], [0], [1], [0, 0, 1, 1], [], []>} : vector<2x32xf32>, vector<32x64xf32>, vector<2x64xf32> -> vector<2x64xf32>
    %c416 = arith.constant 416 : index
    %c0_177 = arith.constant 0 : index
    %321 = vector.load %arg5[%c416, %c0_177] : memref<424x128xf32, #tpu.memory_space<vmem>>, vector<1x64xf32>
    %322 = vector.broadcast %321 : vector<1x64xf32> to vector<2x64xf32>
    %323 = arith.addf %320, %322 : vector<2x64xf32>
    %324 = vector.extract_strided_slice %323 {offsets = [0, 5], sizes = [2, 1], strides = [1, 1]} : vector<2x64xf32> to vector<2x1xf32>
    %325 = vector.extract_strided_slice %323 {offsets = [0, 7], sizes = [2, 1], strides = [1, 1]} : vector<2x64xf32> to vector<2x1xf32>
    %326 = tpu.concatenate %324, %325 in 1 : vector<2x1xf32>, vector<2x1xf32> -> vector<2x2xf32>
    %cst_178 = arith.constant dense<0xFF800000> : vector<2xf32>
    %327 = vector.multi_reduction <maximumf>, %326, %cst_178 [1] : vector<2x2xf32> to vector<2xf32>
    %328 = vector.shape_cast %327 : vector<2xf32> to vector<2x1xf32>
    %329 = vector.broadcast %328 : vector<2x1xf32> to vector<2x2xf32>
    %330 = arith.subf %326, %329 : vector<2x2xf32>
    %331 = math.exp %330 : vector<2x2xf32>
    %cst_179 = arith.constant dense<0.000000e+00> : vector<2xf32>
    %332 = vector.multi_reduction <add>, %331, %cst_179 [1] : vector<2x2xf32> to vector<2xf32>
    %333 = vector.shape_cast %332 : vector<2xf32> to vector<2x1xf32>
    %334 = tpu.reciprocal %333 {approx = true} : vector<2x1xf32> -> vector<2x1xf32>
    %335 = vector.broadcast %334 : vector<2x1xf32> to vector<2x2xf32>
    %336 = arith.mulf %331, %335 : vector<2x2xf32>
    %c0_180 = arith.constant 0 : index
    %c0_181 = arith.constant 0 : index
    %337 = vector.load %arg4[%c0_180, %c0_181] : memref<2x2xf32, #tpu.memory_space<vmem>>, vector<2x2xf32>
    %338 = tpu.iota {dimensions = array<i32: 1>} : vector<2x2xi32>
    %cst_182 = arith.constant dense<0xFF800000> : vector<2xf32>
    %339 = vector.multi_reduction <maximumf>, %337, %cst_182 [1] : vector<2x2xf32> to vector<2xf32>
    %340 = vector.shape_cast %339 : vector<2xf32> to vector<2x1xf32>
    %341 = vector.broadcast %340 : vector<2x1xf32> to vector<2x2xf32>
    %342 = arith.cmpf oge, %337, %341 : vector<2x2xf32>
    %c2_i32 = arith.constant 2 : i32
    %343 = vector.broadcast %c2_i32 : i32 to vector<2x2xi32>
    %344 = arith.select %342, %338, %343 : vector<2x2xi1>, vector<2x2xi32>
    %cst_183 = arith.constant dense<2147483647> : vector<2xi32>
    %345 = vector.multi_reduction <minsi>, %344, %cst_183 [1] : vector<2x2xi32> to vector<2xi32>
    %346 = vector.shape_cast %345 : vector<2xi32> to vector<2x1xi32>
    %347 = vector.broadcast %346 : vector<2x1xi32> to vector<2x2xi32>
    %348 = arith.cmpi eq, %338, %347 : vector<2x2xi32>
    %349 = arith.extui %348 : vector<2x2xi1> to vector<2x2xi32>
    %350 = arith.sitofp %349 : vector<2x2xi32> to vector<2x2xf32>
    %351 = math.log %333 : vector<2x1xf32>
    %352 = arith.addf %328, %351 : vector<2x1xf32>
    %353 = arith.mulf %350, %326 : vector<2x2xf32>
    %cst_184 = arith.constant dense<0.000000e+00> : vector<2xf32>
    %354 = vector.multi_reduction <add>, %353, %cst_184 [1] : vector<2x2xf32> to vector<2xf32>
    %355 = vector.shape_cast %354 : vector<2xf32> to vector<2x1xf32>
    %356 = arith.subf %352, %355 : vector<2x1xf32>
    %357 = vector.shape_cast %356 : vector<2x1xf32> to vector<1x2x1xf32>
    %cst_185 = arith.constant dense<0.000000e+00> : vector<1xf32>
    %358 = vector.multi_reduction <add>, %357, %cst_185 [1, 2] : vector<1x2x1xf32> to vector<1xf32>
    %359 = vector.shape_cast %358 : vector<1xf32> to vector<1x1x1xf32>
    %360 = vector.extract %359[0, 0, 0] : f32 from vector<1x1x1xf32>
    %cst_186 = arith.constant 2.000000e+00 : f32
    %361 = arith.divf %360, %cst_186 : f32
    %c0_187 = arith.constant 0 : index
    %c0_188 = arith.constant 0 : index
    %362 = memref.load %arg6[%c0_187, %c0_188] : memref<1x1xf32, #tpu.memory_space<smem>>
    memref.store %361, %arg6[%c0_187, %c0_188] : memref<1x1xf32, #tpu.memory_space<smem>>
    %cst_189 = arith.constant 0.000000e+00 : f32
    %363 = vector.broadcast %cst_189 : f32 to vector<2x126xf32>
    %364 = tpu.concatenate %336, %363 in 1 : vector<2x2xf32>, vector<2x126xf32> -> vector<2x128xf32>
    %c0_190 = arith.constant 0 : index
    %c0_191 = arith.constant 0 : index
    %365 = vector.load %arg7[%c0_190, %c0_191] : memref<2x128xf32, #tpu.memory_space<vmem>>, vector<2x128xf32>
    tpu.vector_store %arg7[%c0_190, %c0_191], %364 {strides = array<i32>} : memref<2x128xf32, #tpu.memory_space<vmem>>, vector<2x128xf32>,
    return
  }
}

</mosaic_0001>

<bundles_post_ra>
// kernel: prompt_idrc_forward.1
= control target key start
LH: loop header
LB: loop body
LE: loop exit
PB: predicated region body
PF: predicated region fallthrough
CT: control target
= control target key end

     0   :  { %13 = vsyncpa [#allocation5], 0  ;;  %s2223_s0 = inlined_call_operand.hbm [shape: s32[2,8], index: 0, kind: input, shape index: {}]   ;;  %s2224_s1 = inlined_call_operand.vmem [shape: s32[2,8], index: 1, kind: input, shape index: {}]   ;;  %s2225_s2 = inlined_call_operand.hbm [shape: s32[2,8], index: 2, kind: input, shape index: {}]   ;;  %s2226_s3 = inlined_call_operand.vmem [shape: s32[2,8], index: 3, kind: input, shape index: {}]   ;;  %s2227_s4 = inlined_call_operand.vmem [shape: f32[2,2], index: 4, kind: input, shape index: {}]   ;;  %s2228_s5 = inlined_call_operand.hbm [shape: f32[424,128], index: 5, kind: input, shape index: {}]   ;;  %s2229_s6 = inlined_call_operand.hbm [shape: f32[1,1], index: 6, kind: output, shape index: {0}]   ;;  %s2230_s7 = inlined_call_operand.hbm [shape: f32[2,128], index: 7, kind: output, shape index: {1}]  }
   0x1   :  { %14 = vsyncpa [#allocation7], 0 }
   0x2   :  { %15 = vsyncpa [#allocation3], 0 }
   0x3   :  { %16 = vsyncpa [#allocation11], 0 }
   0x4   :  { %17 = vsyncpa [#allocation6], 0 }
   0x5   :  { %18 = vsyncpa [#allocation4], 0  ;;  %s33_s26 = sshll.u32 %s2224_s1, 4  ;;  %s1856_s29 = scalar_lea.hbm %s2223_s0, 32  ;;  %s34_s26 = int_to_ptr.vmem [resolvable:$true] %s33_s26 }
   0x6   :  { %p1857_p0 = scmp.ne.s32.totalorder %s2223_s0, %s1856_s29  ;;  %p1860_p1 = scmp.lt.u32.totalorder %s1856_s29, %s2223_s0 }
   0x8   :  { %p1862_p2 = pnand %p1860_p1, %p1857_p0 }
   0xa   :  { %1865 = shalt.err (!%p1862_p2)
}
   0xb   :  { %s1966_s11 = smov [#allocation2]   ;;  %s1866_s1 = scalar_lea.vmem %s34_s26, 32 }
   0xc   :  { %26 = dma.hbm_to_smem %s2223_s0, 32, %s1966_s11, [#allocation5]  }
   0xd   :  { %p1867_p3 = scmp.ne.s32.totalorder %s34_s26, %s1866_s1  ;;  %p1871_p4 = scmp.lt.s32.totalorder %s34_s26, %s34_s26 }
   0xe   :  { %p1872_p5 = scmp.lt.s32.totalorder %s1866_s1, %s1866_s1 }
  0x10   :  { %p1873_p6 = por %p1872_p5, %p1871_p4 }
  0x12   :  { %p1874_p7 = pnand %p1873_p6, %p1867_p3 }
  0x14   :  { %1877 = shalt.err (!%p1874_p7)
}
  0x15   :  { %s1967_s14 = smov [#allocation8]   ;;  %s1968_s15 = smov [#allocation9]  }
  0x16   :  { %36 = dma.vmem_to_smem %s34_s26, 32, %s1967_s14, [#allocation7]  }
  0x17   :  { %s43_s16 = sshll.u32 %s1968_s15, 4  ;;  %s1969_s17 = smov [#allocation10]   ;;  %s44_s16 = int_to_ptr.vmem [resolvable:$true] %s43_s16 }
  0x18   :  { %s56_s18 = sshll.u32 %s1969_s17, 4  ;;  %s1878_s0 = scalar_lea.hbm %s2225_s2, 32  ;;  %s2036_s18 = int_to_ptr.vmem [resolvable:$true] %s56_s18 }
  0x19   :  { %p1879_p8 = scmp.ne.s32.totalorder %s2225_s2, %s1878_s0  ;;  %p1882_p9 = scmp.lt.u32.totalorder %s1878_s0, %s2225_s2 }
  0x1b   :  { %p1884_p10 = pnand %p1882_p9, %p1879_p8 }
  0x1d   :  { %1887 = shalt.err (!%p1884_p10)
}
  0x1e   :  { %s1888_s25 = scalar_lea.vmem %s44_s16, 32  ;;  %p1893_p12 = scmp.lt.s32.totalorder %s44_s16, %s44_s16 }
  0x1f   :  { %p1889_p11 = scmp.ne.s32.totalorder %s44_s16, %s1888_s25  ;;  %p1894_p13 = scmp.lt.s32.totalorder %s1888_s25, %s1888_s25 }
  0x21   :  { %p1895_p0 = por %p1894_p13, %p1893_p12 }
  0x23   :  { %p1896_p1 = pnand %p1895_p0, %p1889_p11 }
  0x25   :  { %1899 = shalt.err (!%p1896_p1)
}
  0x26   :  { %46 = dma.hbm_to_vmem [thread:$0]  %s2225_s2, 32, %s44_s16, [#allocation3]  }
  0x27   :  { %s1900_s30 = scalar_lea.hbm %s2228_s5, 6784 }
  0x28   :  { %p1901_p2 = scmp.ne.s32.totalorder %s2228_s5, %s1900_s30  ;;  %p1904_p3 = scmp.lt.u32.totalorder %s1900_s30, %s2228_s5 }
  0x2a   :  { %p1906_p4 = pnand %p1904_p3, %p1901_p2 }
  0x2c   :  { %1909 = shalt.err (!%p1906_p4)
}
  0x2d   :  { %s1910_s12 = scalar_lea.vmem %s2036_s18, 6784  ;;  %p1915_p6 = scmp.lt.s32.totalorder %s2036_s18, %s2036_s18 }
  0x2e   :  { %p1911_p5 = scmp.ne.s32.totalorder %s2036_s18, %s1910_s12  ;;  %p1916_p7 = scmp.lt.s32.totalorder %s1910_s12, %s1910_s12 }
  0x30   :  { %p1917_p8 = por %p1916_p7, %p1915_p6 }
  0x32   :  { %p1918_p9 = pnand %p1917_p8, %p1911_p5 }
  0x34   :  { %1921 = shalt.err (!%p1918_p9)
}
  0x35   :  { %s1970_s2 = smov 128   ;;  %s1971_s13 = smov 8  }
  0x36   :  { %62 = dma.hbm_to_vmem [thread:$0]  %s2228_s5, 6784, %s2036_s18, [#allocation11], %s1970_s2, %s1970_s2, %s1971_s13  }
  0x37   :  { %1954 = dma.done.wait [#allocation5], 32  }
  0x38   :  { %1955 = vsyncadd [#allocation5], 4294967264 }
  0x39   :  { %1956 = dma.done.wait [#allocation7], 32  }
  0x3a   :  { %1957 = vsyncadd [#allocation7], 4294967264 }
  0x3b   :  { %1958 = dma.done.wait [#allocation3], 32  }
  0x3c   :  { %1959 = vsyncadd [#allocation3], 4294967264 }
  0x3d   :  { %1960 = dma.done.wait [#allocation11], 6784  }
  0x3e   :  { %1961 = vsyncadd [#allocation11], 4294960512 }
  0x3f   :  { %75 = sfence }
  0x40   :  { %s76_s15 = sld [smem:[#allocation2]]  ;;  %s1513_s17 = sld [smem:[#allocation2 + $0x1]]  ;;  %vm246_vm0 = vcmask 1040384   ;;  %vm248_vm1 = vcmask 1041408   ;;  %vm250_vm2 = vcmask 1042432   ;;  %vm252_vm3 = vcmask 1043456  }
  0x41   :  { %s77_s16 = sld [smem:[#allocation8]]  ;;  %s1514_s19 = sld [smem:[#allocation8 + $0x1]]  ;;  %vm254_vm4 = vcmask 1044480   ;;  %vm256_vm5 = vcmask 1045504   ;;  %vm258_vm6 = vcmask 1046528   ;;  %v267_v41 = vld [vmem:[#allocation10 + $0x48] sm:$0xff] }
  0x42   :  { %s1516_s20 = sld [smem:[#allocation2 + $0x2]]  ;;  %s1519_s21 = sld [smem:[#allocation2 + $0x3]]  ;;  %vm272_vm7 = vcmask 261120   ;;  %vm1973_vm8 = vmmov 0   ;;  %vm489_vm9 = vcmask 64512   ;;  %vm1368_vm10 = vcmask 9216  }
  0x43   :  { %s1517_s0 = sld [smem:[#allocation8 + $0x2]]  ;;  %s1520_s22 = sld [smem:[#allocation8 + $0x3]]  ;;  %vm1366_vm12 = vcmask 7168   ;;  %vm1430_vm15 = vcmask 15360  }
  0x44   :  { %s1522_s23 = sld [smem:[#allocation2 + $0x4]]  ;;  %s2067_s5 = sld [smem:[#allocation2 + $0x5]] }
  0x45   :  { %s1523_s24 = sld [smem:[#allocation8 + $0x4]]  ;;  %s2069_s18 = sld [smem:[#allocation8 + $0x5]] }
  0x46   :  { %s78_s25 = scalar_lea.vmem [#allocation10], %s76_s15  ;;  %s86_s27 = scalar_lea.vmem [#allocation10], %s1513_s17 }
  0x47   :  { %v79_v0 = vld [vmem:[%s78_s25] sm:$0x1]  ;;  %s1465_s26 = scalar_lea.vmem [#allocation10], %s77_s16  ;;  %s1468_s28 = scalar_lea.vmem [#allocation10], %s1514_s19 }
  0x48   :  { %v1512_v1 = vld [vmem:[%s1465_s26 + $0x40] sm:$0x1]  ;;  %s94_s29 = scalar_lea.vmem [#allocation10], %s1516_s20  ;;  %s102_s8 = scalar_lea.vmem [#allocation10], %s1519_s21 }
  0x49   :  { %v87_v2 = vld [vmem:[%s86_s27] sm:$0x1]  ;;  %s1471_s30 = scalar_lea.vmem [#allocation10], %s1517_s0  ;;  %s1474_s9 = scalar_lea.vmem [#allocation10], %s1520_s22  ;;  %v83_v10 = vadd.f32 %v1512_v1, %v79_v0 }
  0x4a   :  { %v1515_v3 = vld [vmem:[%s1468_s28 + $0x40] sm:$0x1]  ;;  %s110_s10 = scalar_lea.vmem [#allocation10], %s1522_s23  ;;  %s118_s12 = scalar_lea.vmem [#allocation10], %s2067_s5 }
  0x4b   :  { %v91_v4 = vadd.f32 %v1515_v3, %v87_v2  ;;  %v95_v5 = vld [vmem:[%s94_s29] sm:$0x1]  ;;  %s1477_s11 = scalar_lea.vmem [#allocation10], %s1523_s24  ;;  %s1480_s2 = scalar_lea.vmem [#allocation10], %s2069_s18 }
  0x4c   :  { %v1518_v6 = vld [vmem:[%s1471_s30 + $0x40] sm:$0x1]  ;;  %s1528_s13 = sld [smem:[#allocation2 + $0x6]]  ;;  %s2075_s14 = sld [smem:[#allocation2 + $0x7]] }
  0x4d   :  { %v99_v7 = vadd.f32 %v1518_v6, %v95_v5  ;;  %v103_v8 = vld [vmem:[%s102_s8] sm:$0x1]  ;;  %s2073_s1 = sld [smem:[#allocation8 + $0x6]]  ;;  %v205_v17 = vrot.slane %v91_v4, 7  ;;  %s2077_s15 = sld [smem:[#allocation8 + $0x7]] }
  0x4e   :  { %v1521_v9 = vld [vmem:[%s1474_s9 + $0x40] sm:$0x1]  ;;  %s1534_s16 = sld [smem:[#allocation2 + $0x80]]  ;;  %s2082_s19 = sld [smem:[#allocation2 + $0x81]] }
  0x4f   :  { %v107_v11 = vadd.f32 %v1521_v9, %v103_v8  ;;  %v111_v12 = vld [vmem:[%s110_s10] sm:$0x1]  ;;  %v208_v18 = vrot.slane %v99_v7, 6  ;;  %v247_v22 = vsel %vm246_vm0, %v83_v10, %v205_v17  ;;  %s2080_s17 = sld [smem:[#allocation8 + $0x80]]  ;;  %s2085_s20 = sld [smem:[#allocation8 + $0x81]] }
  0x50   :  { %v1524_v13 = vld [vmem:[%s1477_s11 + $0x40] sm:$0x1]  ;;  %s2087_s0 = sld [smem:[#allocation2 + $0x82]]  ;;  %s2092_s22 = sld [smem:[#allocation2 + $0x83]] }
  0x51   :  { %v115_v14 = vadd.f32 %v1524_v13, %v111_v12  ;;  %v119_v15 = vld [vmem:[%s118_s12] sm:$0x1]  ;;  %v211_v20 = vrot.slane %v107_v11, 5  ;;  %v249_v23 = vsel %vm248_vm1, %v247_v22, %v208_v18  ;;  %s2090_s21 = sld [smem:[#allocation8 + $0x82]]  ;;  %s2094_s23 = sld [smem:[#allocation8 + $0x83]] }
  0x52   :  { %v1527_v16 = vld [vmem:[%s1480_s2 + $0x40] sm:$0x1]  ;;  %s126_s24 = scalar_lea.vmem [#allocation10], %s1528_s13  ;;  %s134_s18 = scalar_lea.vmem [#allocation10], %s2075_s14 }
  0x53   :  { %v123_v19 = vadd.f32 %v1527_v16, %v119_v15  ;;  %v214_v21 = vrot.slane %v115_v14, 4  ;;  %v251_v24 = vsel %vm250_vm2, %v249_v23, %v211_v20  ;;  %v127_v26 = vld [vmem:[%s126_s24] sm:$0x1]  ;;  %s1483_s5 = scalar_lea.vmem [#allocation10], %s2073_s1  ;;  %s1486_s25 = scalar_lea.vmem [#allocation10], %s2077_s15 }
  0x54   :  { %v1530_v28 = vld [vmem:[%s1483_s5 + $0x40] sm:$0x1]  ;;  %s142_s26 = scalar_lea.vmem [#allocation10], %s1534_s16  ;;  %s150_s28 = scalar_lea.vmem [#allocation10], %s2082_s19 }
  0x55   :  { %v217_v25 = vrot.slane %v123_v19, 3  ;;  %v253_v27 = vsel %vm252_vm3, %v251_v24, %v214_v21  ;;  %v135_v29 = vld [vmem:[%s134_s18] sm:$0x1]  ;;  %v131_v30 = vadd.f32 %v1530_v28, %v127_v26  ;;  %s1489_s27 = scalar_lea.vmem [#allocation10], %s2080_s17  ;;  %s1492_s29 = scalar_lea.vmem [#allocation10], %s2085_s20  ;;  %v313_v28 = vld [vmem:[#allocation10 + $0x68] sm:$0xff] }
  0x56   :  { %v1533_v31 = vld [vmem:[%s1486_s25 + $0x40] sm:$0x1]  ;;  %s158_s30 = scalar_lea.vmem [#allocation10], %s2087_s0  ;;  %s166_s9 = scalar_lea.vmem [#allocation10], %s2092_s22 }
  0x57   :  { %v143_v32 = vld [vmem:[%s142_s26] sm:$0x1]  ;;  %v139_v33 = vadd.f32 %v1533_v31, %v135_v29  ;;  %v255_v34 = vsel %vm254_vm4, %v253_v27, %v217_v25  ;;  %v220_v37 = vrot.slane %v131_v30, 2  ;;  %s1495_s8 = scalar_lea.vmem [#allocation10], %s2090_s21  ;;  %s1498_s10 = scalar_lea.vmem [#allocation10], %s2094_s23  ;;  %v312_v27 = vld [vmem:[#allocation10 + $0x60] sm:$0xff] }
  0x58   :  { %v1536_v35 = vld [vmem:[%s1489_s27 + $0x40] sm:$0x1]  ;;  %s1546_s11 = sld [smem:[#allocation2 + $0x84]]  ;;  %s1549_s2 = sld [smem:[#allocation2 + $0x85]]  ;;  %v314_v29 = vld [vmem:[#allocation10 + $0x70] sm:$0xff]  ;;  %v1747_v30 = vpack.c.bf16 %v313_v28, %v312_v27 }
  0x59   :  { %v151_v36 = vld [vmem:[%s150_s28] sm:$0x1]  ;;  %v223_v40 = vrot.slane %v139_v33, 1  ;;  %v257_v44 = vsel %vm256_vm5, %v255_v34, %v220_v37  ;;  %v147_v45 = vadd.f32 %v1536_v35, %v143_v32  ;;  %s1547_s12 = sld [smem:[#allocation8 + $0x84]]  ;;  %s1550_s13 = sld [smem:[#allocation8 + $0x85]] }
  0x5a   :  { %v1539_v38 = vld [vmem:[%s1492_s29 + $0x40] sm:$0x1]  ;;  %s1552_s1 = sld [smem:[#allocation2 + $0x86]]  ;;  %s1555_s15 = sld [smem:[#allocation2 + $0x87]]  ;;  %1748 = vmatprep.subr.bf16.mxu1 %v1747_v30 }
  0x5b   :  { %v159_v39 = vld [vmem:[%s158_s30] sm:$0x1]  ;;  %v155_v42 = vadd.f32 %v1539_v38, %v151_v36  ;;  %v259_v49 = vsel %vm258_vm6, %v257_v44, %v223_v40  ;;  %s1553_s14 = sld [smem:[#allocation8 + $0x86]]  ;;  %s1556_s16 = sld [smem:[#allocation8 + $0x87]]  ;;  %1750 = vmatpush3.bf16.msra.mxu1 %v1747_v30  ;;  %v1558_v38 = vld [vmem:[#allocation10 + $0x50] ss:$0 sm:$0xff] }
  0x5c   :  { %v1542_v43 = vld [vmem:[%s1495_s8 + $0x40] sm:$0x1]  ;;  %v268_v51 = vadd.f32 %v267_v41, %v259_v49  ;;  %v1972_v49 = vmov 0.0   ;;  %s1974_s5 = smov 96   ;;  %s1975_s18 = smov 64  }
  0x5d   :  { %v163_v46 = vadd.f32 %v1542_v43, %v159_v39  ;;  %v167_v47 = vld [vmem:[%s166_s9] sm:$0x1]  ;;  %v226_v50 = vrot.slane %v155_v42, 7  ;;  %1659 = vmatprep.subr.mxu0 %v1972_v49  ;;  %1661 = vmatprep.mubr.msk.f32.mxu0 %vm1973_vm8, %v1972_v49  ;;  %s1977_s28 = smov 122   ;;  %s1978_s29 = smov 123  }
  0x5e   :  { %v1545_v48 = vld [vmem:[%s1498_s10 + $0x40] sm:$0x1]  ;;  %v273_v54 = vsel %vm272_vm7, %v268_v51, 0.0  ;;  %s174_s17 = scalar_lea.vmem [#allocation10], %s1546_s11  ;;  %s182_s20 = scalar_lea.vmem [#allocation10], %s1549_s2 }
  0x5f   :  { %v171_v52 = vadd.f32 %v1545_v48, %v167_v47  ;;  %v229_v53 = vrot.slane %v163_v46, 6  ;;  %v260_v55 = vsel %vm246_vm0, %v147_v45, %v226_v50  ;;  %274 = vadd.xlane.f32.xlu0 %v273_v54  ;;  %v175_v57 = vld [vmem:[%s174_s17] sm:$0x1]  ;;  %s1501_s19 = scalar_lea.vmem [#allocation10], %s1547_s12  ;;  %s1504_s0 = scalar_lea.vmem [#allocation10], %s1550_s13 }
  0x60   :  { %v1548_v59 = vld [vmem:[%s1501_s19 + $0x40] sm:$0x1]  ;;  %s190_s21 = scalar_lea.vmem [#allocation10], %s1552_s1  ;;  %s198_s23 = scalar_lea.vmem [#allocation10], %s1555_s15  ;;  %v1560_v50 = vld [vmem:[#allocation10 + $0x80] ss:$0 sm:$0xff] }
  0x61   :  { %v232_v56 = vrot.slane %v171_v52, 5  ;;  %v261_v58 = vsel %vm248_vm1, %v260_v55, %v229_v53  ;;  %v183_v60 = vld [vmem:[%s182_s20] sm:$0x1]  ;;  %v179_v61 = vadd.f32 %v1548_v59, %v175_v57  ;;  %s1507_s22 = scalar_lea.vmem [#allocation10], %s1553_s14  ;;  %s1510_s24 = scalar_lea.vmem [#allocation10], %s1556_s16  ;;  %v484_v59 = vlaneseq }
  0x62   :  { %v1551_v62 = vld [vmem:[%s1504_s0 + $0x40] sm:$0x1] }
  0x63   :  { %v191_v63 = vld [vmem:[%s190_s21] sm:$0x1]  ;;  %v187_v0 = vadd.f32 %v1551_v62, %v183_v60  ;;  %v262_v3 = vsel %vm250_vm2, %v261_v58, %v232_v56  ;;  %v235_v6 = vrot.slane %v179_v61, 4  ;;  %v485_v61 = vshrl.u32 %v484_v59, 7 }
  0x64   :  { %v1554_v1 = vld [vmem:[%s1507_s22 + $0x40] sm:$0x1] }
  0x65   :  { %v199_v2 = vld [vmem:[%s198_s23] sm:$0x1]  ;;  %v195_v4 = vadd.f32 %v1554_v1, %v191_v63  ;;  %v238_v8 = vrot.slane %v187_v0, 3  ;;  %v263_v10 = vsel %vm252_vm3, %v262_v3, %v235_v6  ;;  %v657_v63 = vsub.s32 1, %v485_v61 }
  0x66   :  { %v1557_v5 = vld [vmem:[%s1510_s24 + $0x40] sm:$0x1]  ;;  %v486_v0 = vsub.s32 0, %v485_v61 }
  0x67   :  { %v203_v7 = vadd.f32 %v1557_v5, %v199_v2  ;;  %v241_v9 = vrot.slane %v195_v4, 2  ;;  %v264_v12 = vsel %vm254_vm4, %v263_v10, %v238_v8  ;;  %v315_v31 = vld [vmem:[#allocation10 + $0x78] sm:$0xff] }
  0x68   :  { %v1751_v32 = vpack.c.bf16 %v315_v31, %v314_v29  ;;  %v402_v57 = vld [vmem:[#allocation9] sm:$0x3] }
  0x69   :  { %v244_v11 = vrot.slane %v203_v7, 1  ;;  %v265_v13 = vsel %vm256_vm5, %v264_v12, %v241_v9  ;;  %v403_v58 = vcvt.s32.f32 %v402_v57 }
  0x6a   :  { %1752 = vmatprep.subr.bf16.mxu1 %v1751_v32 }
  0x6b   :  { %v266_v14 = vsel %vm258_vm6, %v265_v13, %v244_v11  ;;  %1754 = vmatpush3.bf16.msra.mxu1 %v1751_v32  ;;  %v482_v60 = vsub.f32 1.0, %v403_v58 }
  0x6c   :  { %v269_v15 = vadd.f32 %v267_v41, %v266_v14  ;;  %v1559_v41 = vld [vmem:[#allocation10 + $0x58] ss:$0 sm:$0xff]  ;;  %1649 = vmatprep.subr.mxu1 %v1972_v49 }
  0x6d   :  { %v483_v62 = vmul.f32 -1e+09, %v482_v60 }
  0x6e   :  { %v276_v16 = vsel %vm272_vm7, %v269_v15, 0.0 }
  0x6f   :  { %277 = vadd.xlane.f32.xlu0 %v276_v16  ;;  %v658_v1 = vrot.slane %v483_v62, %v657_v63  ;;  %v487_v3 = vrot.slane %v483_v62, %v486_v0  ;;  %v880_v63 = vld [vmem:[#allocation10 + $0xc8] sm:$0xff] }
  0xec   :  { %v275_v17 = vpop.xlane.xlu0 %274 }
  0xed   :  { %v280_v18 = vmul.f32 0.03125, %v275_v17 }
  0xef   :  { %v282_v19 = vsub.f32 %v268_v51, %v280_v18 }
  0xf1   :  { %v284_v20 = vmul.f32 %v282_v19, %v282_v19 }
  0xf3   :  { %v286_v21 = vsel %vm272_vm7, %v284_v20, 0.0 }
  0xf4   :  { %287 = vadd.xlane.f32.xlu1 %v286_v21 }
  0xfc   :  { %v278_v22 = vpop.xlane.xlu0 %277 }
  0xfd   :  { %v281_v23 = vmul.f32 0.03125, %v278_v22 }
  0xff   :  { %v283_v24 = vsub.f32 %v269_v15, %v281_v23  ;;  %v747_v23 = vld [vmem:[#allocation10 + $0x88] sm:$0xff] }
 0x101   :  { %v285_v25 = vmul.f32 %v283_v24, %v283_v24 }
 0x103   :  { %v289_v26 = vsel %vm272_vm7, %v285_v25, 0.0 }
 0x104   :  { %290 = vadd.xlane.f32.xlu1 %v289_v26 }
 0x181   :  { %v288_v33 = vpop.xlane.xlu1 %287 }
 0x182   :  { %v292_v34 = vmul.f32 0.03125, %v288_v33 }
 0x184   :  { %v294_v35 = vadd.f32 1e-12, %v292_v34  ;;  %v749_v34 = vld [vmem:[#allocation10 + $0x98] sm:$0xff] }
 0x186   :  { %1826 = vrsqrt.f32 %v294_v35  ;;  %v750_v35 = vld [vmem:[#allocation10 + $0xa0] sm:$0xff] }
 0x190   :  { %v1827_v36 = vpop.eup %1826 }
 0x191   :  { %v291_v37 = vpop.xlane.xlu1 %290  ;;  %v298_v40 = vmul.f32 %v1827_v36, %v282_v19  ;;  %v1759_v36 = vpack.c.bf16 %v750_v35, %v749_v34  ;;  %v997_v34 = vld [vmem:[#allocation10 + $0x138] sm:$0xff] }
 0x192   :  { %v293_v39 = vmul.f32 0.03125, %v291_v37 }
 0x193   :  { %v304_v43 = vmul.f32 %v1558_v38, %v298_v40 }
 0x194   :  { %v295_v42 = vadd.f32 1e-12, %v293_v39 }
 0x195   :  { %v2121_v44 = vadd.f32 %v1559_v41, %v304_v43 }
 0x196   :  { %1828 = vrsqrt.f32 %v295_v42 }
 0x197   :  { %1646 = vmatprep.mubr.msk.f32.mxu1 %vm272_vm7, %v2121_v44 }
 0x1a0   :  { %v1829_v45 = vpop.eup %1828 }
 0x1a1   :  { %v299_v46 = vmul.f32 %v1829_v45, %v283_v24  ;;  %v748_v24 = vld [vmem:[#allocation10 + $0x90] sm:$0xff] }
 0x1a2   :  { %v1755_v25 = vpack.c.bf16 %v748_v24, %v747_v23  ;;  %v989_v23 = vld [vmem:[#allocation10 + $0xf8] sm:$0xff]  ;;  %v990_v24 = vld [vmem:[#allocation10 + $0x100] sm:$0xff] }
 0x1a3   :  { %v305_v47 = vmul.f32 %v1558_v38, %v299_v46 }
 0x1a5   :  { %v2125_v48 = vadd.f32 %v1559_v41, %v305_v47  ;;  %v1569_v41 = vld [vmem:[#allocation10 + $0xa8] ss:$0 sm:$0xff] }
 0x1a7   :  { %1647 = vmatmul.mubr.msk.f32.vlgmr.msra.gmra.mrb[0].mxu1 %vm272_vm7, %v2125_v48 }
 0x1a8   :  { %1651 = vmatprep.mubr.msk.f32.mxu1 %vm1973_vm8, %v1972_v49 }
 0x27a   :  { %v1648_v51 = vpop.f32.mrb[0].mxu1 }
 0x27b   :  { %v399_v52 = vadd.f32 %v1648_v51, %v1560_v50  ;;  %v393_v53 = vpop.f32.mrb[1].mxu1 }
 0x27c   :  { %v394_v54 = vadd.f32 %v1560_v50, %v393_v53 }
 0x27d   :  { %578 = vrot.lane.b32.xlu1 %v399_v52, %s1974_s5 }
 0x27e   :  { %405 = vrot.lane.b32.xlu0 %v394_v54, %s1974_s5 }
 0x2ef   :  { %v579_v55 = vpop.permute.xlu1 %578 }
 0x2f0   :  { %1660 = vmatpush3.xpose.msk.msra.mxu0 %vm272_vm7, %v579_v55  ;;  %v406_v56 = vpop.permute.xlu0 %405 }
 0x2f1   :  { %1650 = vmatpush3.xpose.msk.msra.mxu1 %vm272_vm7, %v406_v56  ;;  %1756 = vmatprep.subr.bf16.mxu0 %v1755_v25 }
 0x2f2   :  { %1654 = vmatprep.subr.mxu1 %v1972_v49 }
 0x2f3   :  { %1662 = vmatmul.mubr.msk.f32.vlgmr.msra.gmra.mrb[0].mxu0 %vm272_vm7, %v399_v52 }
 0x2f4   :  { %1652 = vmatmul.mubr.msk.f32.vlgmr.msra.gmra.mrb[2].mxu1 %vm272_vm7, %v394_v54  ;;  %1758 = vmatpush3.bf16.msra.mxu0 %v1755_v25  ;;  %v1775_v25 = vpack.c.bf16 %v990_v24, %v989_v23 }
 0x2f5   :  { %1656 = vmatprep.mubr.msk.f32.mxu1 %vm1973_vm8, %v1972_v49  ;;  %1760 = vmatprep.subr.bf16.mxu0 %v1759_v36 }
 0x2f8   :  { %1762 = vmatpush3.bf16.msra.mxu0 %v1759_v36  ;;  %v998_v36 = vld [vmem:[#allocation10 + $0x140] sm:$0xff] }
 0x3c6   :  { %v650_v2 = vpop.f32.mrb[0].mxu0 }
 0x3c7   :  { %v654_v4 = vmul.f32 0.17677669, %v650_v2  ;;  %v477_v5 = vpop.f32.mrb[2].mxu1  ;;  %v1663_v6 = vpop.f32.mrb[1].mxu0  ;;  %v882_v2 = vld [vmem:[#allocation10 + $0xd8] sm:$0xff] }
 0x3c8   :  { %v481_v7 = vmul.f32 0.17677669, %v477_v5  ;;  %v1653_v8 = vpop.f32.mrb[3].mxu1 }
 0x3c9   :  { %v659_v9 = vadd.f32 %v658_v1, %v654_v4  ;;  %v881_v1 = vld [vmem:[#allocation10 + $0xd0] sm:$0xff] }
 0x3ca   :  { %v488_v10 = vadd.f32 %v487_v3, %v481_v7  ;;  %v1767_v3 = vpack.c.bf16 %v882_v2, %v881_v1 }
 0x3cb   :  { %v660_v11 = vsel %vm489_vm9, %v659_v9, -inf }
 0x3cc   :  { %661 = vmax.xlane.f32.xlu0 %v660_v11  ;;  %v490_v12 = vsel %vm489_vm9, %v488_v10, -inf  ;;  %v1572_v11 = vld [vmem:[#allocation10 + $0xb0] ss:$0 sm:$0xff] }
 0x3cd   :  { %491 = vmax.xlane.f32.xlu1 %v490_v12 }
 0x459   :  { %v662_v13 = vpop.xlane.xlu0 %661 }
 0x45a   :  { %v663_v14 = vsub.f32 %v659_v9, %v662_v13  ;;  %v492_v15 = vpop.xlane.xlu1 %491 }
 0x45b   :  { %v493_v16 = vsub.f32 %v488_v10, %v492_v15  ;;  %v1573_v15 = vld [vmem:[#allocation10 + $0xb8] ss:$0 sm:$0xff] }
 0x45c   :  { %v664_v17 = vmul.f32 1.442695, %v663_v14 }
 0x45d   :  { %v494_v18 = vmul.f32 1.442695, %v493_v16 }
 0x45e   :  { %1830 = vpow2.f32 %v664_v17 }
 0x45f   :  { %1832 = vpow2.f32 %v494_v18 }
 0x468   :  { %v1831_v19 = vpop.eup %1830 }
 0x469   :  { %v1833_v20 = vpop.eup %1832  ;;  %v666_v21 = vsel %vm489_vm9, %v1831_v19, 0.0 }
 0x46a   :  { %667 = vadd.xlane.f32.xlu1 %v666_v21  ;;  %v496_v22 = vsel %vm489_vm9, %v1833_v20, 0.0  ;;  %v988_v21 = vld [vmem:[#allocation10 + $0xf0] sm:$0xff] }
 0x46b   :  { %497 = vadd.xlane.f32.xlu0 %v496_v22 }
 0x47b   :  { %671 = vrot.lane.b32.xlu1 %v399_v52, %s1975_s18 }
 0x481   :  { %501 = vrot.lane.b32.xlu0 %v394_v54, %s1975_s18 }
 0x4f7   :  { %v668_v26 = vpop.xlane.xlu1 %667 }
 0x4f8   :  { %v498_v27 = vpop.xlane.xlu0 %497 }
 0x4f9   :  { %1834 = vrcp.f32 %v498_v27  ;;  %v992_v27 = vld [vmem:[#allocation10 + $0x110] sm:$0xff] }
 0x4fa   :  { %1836 = vrcp.f32 %v668_v26  ;;  %v991_v26 = vld [vmem:[#allocation10 + $0x108] sm:$0xff] }
 0x4fb   :  { %v672_v32 = vpop.permute.xlu1 %671 }
 0x4fc   :  { %v502_v28 = vpop.permute.xlu0 %501 }
 0x4fd   :  { %1655 = vmatpush3.msra.mxu1 %v502_v28  ;;  %v1779_v28 = vpack.c.bf16 %v992_v27, %v991_v26 }
 0x4fe   :  { %1664 = vmatprep.subr.mxu1 %v1972_v49 }
 0x503   :  { %v1835_v29 = vpop.eup %1834 }
 0x504   :  { %v500_v30 = vmul.f32 %v1835_v29, %v1833_v20  ;;  %v1837_v31 = vpop.eup %1836  ;;  %v987_v20 = vld [vmem:[#allocation10 + $0xe8] sm:$0xff]  ;;  %v993_v29 = vld [vmem:[#allocation10 + $0x118] sm:$0xff] }
 0x505   :  { %v670_v33 = vmul.f32 %v1837_v31, %v1831_v19  ;;  %v1771_v22 = vpack.c.bf16 %v988_v21, %v987_v20 }
 0x506   :  { %1657 = vmatmul.mubr.msk.f32.vlgmr.msra.gmra.mrb[4].mxu1 %vm489_vm9, %v500_v30  ;;  %v994_v30 = vld [vmem:[#allocation10 + $0x120] sm:$0xff] }
 0x507   :  { %1665 = vmatpush3.msra.mxu1 %v672_v32  ;;  %1666 = vmatprep.mubr.msk.f32.mxu1 %vm1973_vm8, %v1972_v49  ;;  %v1783_v31 = vpack.c.bf16 %v994_v30, %v993_v29  ;;  %v995_v32 = vld [vmem:[#allocation10 + $0x128] sm:$0xff] }
 0x508   :  { %1772 = vmatprep.subr.bf16.mxu0 %v1771_v22 }
 0x50a   :  { %1667 = vmatmul.mubr.msk.f32.vlgmr.msra.gmra.mrb[6].mxu1 %vm489_vm9, %v670_v33  ;;  %v996_v33 = vld [vmem:[#allocation10 + $0x130] sm:$0xff] }
 0x50b   :  { %v1787_v35 = vpack.c.bf16 %v996_v33, %v995_v32  ;;  %v1578_v32 = vld [vmem:[#allocation10 + $0x170] ss:$0 sm:$0xff] }
 0x5d9   :  { %v573_v37 = vpop.f32.mrb[4].mxu1 }
 0x5da   :  { %v1658_v38 = vpop.f32.mrb[5].mxu1  ;;  %1677 = vmatprep.mubr.msk.f32.mxu0 %vm272_vm7, %v573_v37  ;;  %v1791_v37 = vpack.c.bf16 %v998_v36, %v997_v34  ;;  %v1579_v36 = vld [vmem:[#allocation10 + $0x178] ss:$0 sm:$0xff] }
 0x5db   :  { %v999_v38 = vld [vmem:[#allocation10 + $0x148] sm:$0xff] }
 0x5dd   :  { %v743_v39 = vpop.f32.mrb[6].mxu1 }
 0x5de   :  { %v1668_v40 = vpop.f32.mrb[7].mxu1  ;;  %1678 = vmatmul.mubr.msk.f32.vlgmr.msra.gmra.mrb[2].mxu0 %vm272_vm7, %v743_v39  ;;  %v1000_v39 = vld [vmem:[#allocation10 + $0x150] sm:$0xff] }
 0x5df   :  { %1774 = vmatpush3.bf16.msra.mxu0 %v1771_v22  ;;  %v1795_v40 = vpack.c.bf16 %v1000_v39, %v999_v38 }
 0x5e0   :  { %1776 = vmatprep.subr.bf16.mxu0 %v1775_v25 }
 0x5e3   :  { %1778 = vmatpush3.bf16.msra.mxu0 %v1775_v25 }
 0x5e4   :  { %1780 = vmatprep.subr.bf16.mxu0 %v1779_v28 }
 0x5e7   :  { %1782 = vmatpush3.bf16.msra.mxu0 %v1779_v28 }
 0x5e8   :  { %1784 = vmatprep.subr.bf16.mxu0 %v1783_v31 }
 0x5eb   :  { %1786 = vmatpush3.bf16.msra.mxu0 %v1783_v31 }
 0x5ec   :  { %1788 = vmatprep.subr.bf16.mxu0 %v1787_v35 }
 0x5ef   :  { %1790 = vmatpush3.bf16.msra.mxu0 %v1787_v35  ;;  %v1125_v35 = vld [vmem:[%s2226_s3] sm:$0x3] }
 0x5f0   :  { %1792 = vmatprep.subr.bf16.mxu0 %v1791_v37  ;;  %v1126_v39 = vcvt.s32.f32 %v1125_v35 }
 0x5f3   :  { %1794 = vmatpush3.bf16.msra.mxu0 %v1791_v37 }
 0x5f4   :  { %1796 = vmatprep.subr.bf16.mxu0 %v1795_v40 }
 0x5f7   :  { %1798 = vmatpush3.bf16.msra.mxu0 %v1795_v40 }
 0x6b1   :  { %v1679_v42 = vpop.f32.mrb[2].mxu0 }
 0x6b2   :  { %v834_v43 = vadd.f32 %v1679_v42, %v1569_v41  ;;  %v828_v45 = vpop.f32.mrb[3].mxu0  ;;  %v1002_v42 = vld [vmem:[#allocation10 + $0x160] sm:$0xff] }
 0x6b3   :  { %v829_v46 = vadd.f32 %v1569_v41, %v828_v45  ;;  %v1001_v41 = vld [vmem:[#allocation10 + $0x158] sm:$0xff]  ;;  %v1574_v45 = vld [vmem:[#allocation10 + $0xe0] ss:$0 sm:$0xff] }
 0x6b4   :  { %v838_v47 = vadd.f32 %v834_v43, %v2125_v48  ;;  %v1799_v43 = vpack.c.bf16 %v1002_v42, %v1001_v41  ;;  %v1277_v41 = vld [vmem:[#allocation10 + $0x180] sm:$0xff]  ;;  %v1278_v42 = vld [vmem:[#allocation10 + $0x188] sm:$0xff] }
 0x6b5   :  { %v837_v50 = vadd.f32 %v829_v46, %v2121_v44  ;;  %v879_v44 = vld [vmem:[#allocation10 + $0xc0] sm:$0xff] }
 0x6b6   :  { %v844_v51 = vsel %vm272_vm7, %v838_v47, 0.0  ;;  %v1763_v0 = vpack.c.bf16 %v880_v63, %v879_v44  ;;  %1800 = vmatprep.subr.bf16.mxu0 %v1799_v43 }
 0x6b7   :  { %845 = vadd.xlane.f32.xlu0 %v844_v51  ;;  %v841_v52 = vsel %vm272_vm7, %v837_v50, 0.0  ;;  %1802 = vmatpush3.bf16.msra.mxu0 %v1799_v43 }
 0x6b8   :  { %842 = vadd.xlane.f32.xlu1 %v841_v52  ;;  %1764 = vmatprep.subr.bf16.mxu1 %v1763_v0 }
 0x6b9   :  { %1766 = vmatpush3.bf16.msra.mxu1 %v1763_v0 }
 0x6ba   :  { %1768 = vmatprep.subr.bf16.mxu1 %v1767_v3 }
 0x6bd   :  { %1770 = vmatpush3.bf16.msra.mxu1 %v1767_v3 }
 0x6be   :  { %1726 = vmatprep.subr.mxu1 %v1972_v49 }
 0x744   :  { %v846_v53 = vpop.xlane.xlu0 %845 }
 0x745   :  { %v848_v54 = vmul.f32 0.03125, %v846_v53  ;;  %v843_v55 = vpop.xlane.xlu1 %842 }
 0x746   :  { %v847_v56 = vmul.f32 0.03125, %v843_v55 }
 0x747   :  { %v850_v57 = vsub.f32 %v838_v47, %v848_v54 }
 0x748   :  { %v849_v58 = vsub.f32 %v837_v50, %v847_v56 }
 0x749   :  { %v852_v60 = vmul.f32 %v850_v57, %v850_v57 }
 0x74a   :  { %v851_v61 = vmul.f32 %v849_v58, %v849_v58 }
 0x74b   :  { %v856_v62 = vsel %vm272_vm7, %v852_v60, 0.0 }
 0x74c   :  { %857 = vadd.xlane.f32.xlu1 %v856_v62  ;;  %v853_v48 = vsel %vm272_vm7, %v851_v61, 0.0 }
 0x74d   :  { %854 = vadd.xlane.f32.xlu0 %v853_v48 }
 0x7d9   :  { %v858_v4 = vpop.xlane.xlu1 %857 }
 0x7da   :  { %v860_v5 = vmul.f32 0.03125, %v858_v4  ;;  %v855_v6 = vpop.xlane.xlu0 %854 }
 0x7db   :  { %v859_v7 = vmul.f32 0.03125, %v855_v6 }
 0x7dc   :  { %v862_v8 = vadd.f32 1e-12, %v860_v5  ;;  %v1577_v5 = vld [vmem:[#allocation10 + $0x168] ss:$0 sm:$0xff] }
 0x7dd   :  { %v861_v9 = vadd.f32 1e-12, %v859_v7 }
 0x7de   :  { %1838 = vrsqrt.f32 %v862_v8 }
 0x7df   :  { %1840 = vrsqrt.f32 %v861_v9 }
 0x7e8   :  { %v1839_v10 = vpop.eup %1838 }
 0x7e9   :  { %v1841_v12 = vpop.eup %1840  ;;  %v866_v13 = vmul.f32 %v1839_v10, %v850_v57 }
 0x7ea   :  { %v865_v14 = vmul.f32 %v1841_v12, %v849_v58 }
 0x7eb   :  { %v872_v16 = vmul.f32 %v1572_v11, %v866_v13 }
 0x7ec   :  { %v871_v17 = vmul.f32 %v1572_v11, %v865_v14 }
 0x7ed   :  { %v2163_v19 = vadd.f32 %v1573_v15, %v872_v16 }
 0x7ee   :  { %v2161_v18 = vadd.f32 %v1573_v15, %v871_v17 }
 0x7f0   :  { %1688 = vmatprep.mubr.msk.f32.mxu1 %vm272_vm7, %v2161_v18 }
 0x7f1   :  { %1689 = vmatmul.mubr.msk.f32.vlgmr.msra.gmra.mrb[8].mxu1 %vm272_vm7, %v2163_v19 }
 0x7f2   :  { %1728 = vmatprep.mubr.msk.f32.mxu1 %vm1973_vm8, %v1972_v49 }
 0x8c4   :  { %v1690_v46 = vpop.f32.mrb[8].mxu1 }
 0x8c5   :  { %v966_v47 = vadd.f32 %v1690_v46, %v1574_v45  ;;  %v960_v50 = vpop.f32.mrb[9].mxu1  ;;  %v1804_v46 = vpack.c.bf16 %v1278_v42, %v1277_v41 }
 0x8c6   :  { %v961_v51 = vadd.f32 %v1574_v45, %v960_v50  ;;  %v1200_v45 = vrot.slane %v1126_v39, 1  ;;  %v1279_v50 = vld [vmem:[#allocation10 + $0x190] sm:$0xff] }
 0x8c7   :  { %v970_v52 = vmul.f32 %v966_v47, %v966_v47 }
 0x8c8   :  { %v969_v53 = vmul.f32 %v961_v51, %v961_v51 }
 0x8c9   :  { %v972_v54 = vmul.f32 %v970_v52, %v966_v47 }
 0x8ca   :  { %v971_v55 = vmul.f32 %v969_v53, %v961_v51  ;;  %v1380_v53 = vld [vmem:[%s2227_s4] sm:$0x3]  ;;  %s1979_s4 = smov [#allocation13]  }
 0x8cb   :  { %v974_v56 = vmul.f32 0.044715, %v972_v54  ;;  %v1383_v54 = vsel %vm1368_vm10, %v1380_v53, -inf  ;;  %s1447_s30 = sshll.u32 %s1979_s4, 4  ;;  %s1448_s30 = int_to_ptr.vmem [resolvable:$true] %s1447_s30 }
 0x8cc   :  { %v973_v57 = vmul.f32 0.044715, %v971_v55  ;;  %s1922_s8 = scalar_lea.vmem %s1448_s30, 32  ;;  %p1927_p11 = scmp.lt.s32.totalorder %s1448_s30, %s1448_s30 }
 0x8cd   :  { %v976_v58 = vadd.f32 %v974_v56, %v966_v47  ;;  %p1923_p10 = scmp.ne.s32.totalorder %s1448_s30, %s1922_s8  ;;  %p1928_p12 = scmp.lt.s32.totalorder %s1922_s8, %s1922_s8 }
 0x8ce   :  { %v975_v60 = vadd.f32 %v973_v57, %v961_v51 }
 0x8cf   :  { %v978_v61 = vmul.f32 0.7978846, %v976_v58  ;;  %p1929_p13 = por %p1928_p12, %p1927_p11 }
 0x8d0   :  { %v977_v62 = vmul.f32 0.7978846, %v975_v60 }
 0x8d1   :  { %1842 = vtanh.f32 %v978_v61  ;;  %p1930_p0 = pnand %p1929_p13, %p1923_p10 }
 0x8d2   :  { %1844 = vtanh.f32 %v977_v62  ;;  %v1582_v62 = vld [vmem:[#allocation10 + $0x1a0] ss:$0 sm:$0xff] }
 0x8db   :  { %v1843_v48 = vpop.eup %1842 }
 0x8dc   :  { %v1845_v44 = vpop.eup %1844  ;;  %v982_v63 = vadd.f32 1.0, %v1843_v48 }
 0x8dd   :  { %v981_v0 = vadd.f32 1.0, %v1845_v44 }
 0x8de   :  { %v984_v1 = vmul.f32 0.5, %v982_v63 }
 0x8df   :  { %v983_v2 = vmul.f32 0.5, %v981_v0 }
 0x8e0   :  { %v986_v4 = vmul.f32 %v984_v1, %v966_v47  ;;  %v1976_v47 = vmov 0.0|0.0   ;;  %v1382_v1 = vand.u32 127, %v484_v59 }
 0x8e1   :  { %v985_v3 = vmul.f32 %v983_v2, %v961_v51  ;;  %v1280_v51 = vld [vmem:[#allocation10 + $0x198] sm:$0xff] }
 0x8e2   :  { %v1807_v52 = vpack.c.bf16 %v1280_v51, %v1279_v50 }
 0x8e3   :  { %1723 = vmatprep.mubr.f32.mxu0 %v985_v3 }
 0x8e4   :  { %1724 = vmatmul.mubr.f32.vlgmr.msra.gmra.mrb[4].mxu0 %v986_v4 }
 0x9b7   :  { %v1725_v6 = vpop.f32.mrb[4].mxu0 }
 0x9b8   :  { %v1080_v7 = vadd.f32 %v1725_v6, %v1577_v5  ;;  %v1074_v8 = vpop.f32.mrb[5].mxu0 }
 0x9b9   :  { %v1075_v9 = vadd.f32 %v1577_v5, %v1074_v8 }
 0x9ba   :  { %v1084_v10 = vadd.f32 %v1080_v7, %v2163_v19 }
 0x9bb   :  { %v1083_v11 = vadd.f32 %v1075_v9, %v2161_v18 }
 0x9bc   :  { %v1090_v12 = vsel %vm272_vm7, %v1084_v10, 0.0 }
 0x9bd   :  { %1091 = vadd.xlane.f32.xlu1 %v1090_v12  ;;  %v1087_v13 = vsel %vm272_vm7, %v1083_v11, 0.0 }
 0x9be   :  { %1088 = vadd.xlane.f32.xlu0 %v1087_v13 }
 0xa4a   :  { %v1092_v14 = vpop.xlane.xlu1 %1091 }
 0xa4b   :  { %v1094_v15 = vmul.f32 0.03125, %v1092_v14  ;;  %v1089_v16 = vpop.xlane.xlu0 %1088 }
 0xa4c   :  { %v1093_v17 = vmul.f32 0.03125, %v1089_v16 }
 0xa4d   :  { %v1096_v20 = vsub.f32 %v1084_v10, %v1094_v15 }
 0xa4e   :  { %v1095_v21 = vsub.f32 %v1083_v11, %v1093_v17 }
 0xa4f   :  { %v1098_v22 = vmul.f32 %v1096_v20, %v1096_v20 }
 0xa50   :  { %v1097_v23 = vmul.f32 %v1095_v21, %v1095_v21 }
 0xa51   :  { %v1102_v24 = vsel %vm272_vm7, %v1098_v22, 0.0 }
 0xa52   :  { %1103 = vadd.xlane.f32.xlu1 %v1102_v24  ;;  %v1099_v19 = vsel %vm272_vm7, %v1097_v23, 0.0 }
 0xa53   :  { %1100 = vadd.xlane.f32.xlu0 %v1099_v19 }
 0xa57   :  { %1384 = vmax.xlane.f32.xlu0 %v1383_v54 }
 0xadf   :  { %v1104_v18 = vpop.xlane.xlu1 %1103 }
 0xae0   :  { %v1106_v25 = vmul.f32 0.03125, %v1104_v18  ;;  %v1101_v26 = vpop.xlane.xlu0 %1100 }
 0xae1   :  { %v1105_v27 = vmul.f32 0.03125, %v1101_v26 }
 0xae2   :  { %v1108_v28 = vadd.f32 1e-12, %v1106_v25 }
 0xae3   :  { %v1107_v29 = vadd.f32 1e-12, %v1105_v27 }
 0xae4   :  { %1846 = vrsqrt.f32 %v1108_v28  ;;  %v1385_v0 = vpop.xlane.xlu0 %1384 }
 0xae5   :  { %1848 = vrsqrt.f32 %v1107_v29  ;;  %vm1386_vm11 = vcmp.ge.f32.partialorder %v1380_v53, %v1385_v0 }
 0xae6   :  { %v1387_v2 = vsel %vm1386_vm11, %v1382_v1, 2 }
 0xae7   :  { %v1388_v3 = vsel %vm1368_vm10, %v1387_v2, 2147483647 }
 0xae8   :  { %v1390_v4 = vshra.s32 %v1388_v3, 16  ;;  %v1389_v10 = vand.u32 65535, %v1388_v3 }
 0xaea   :  { %v1392_v5 = vcvt.s32.f32 %v1390_v4  ;;  %v1391_v12 = vcvt.s32.f32 %v1389_v10 }
 0xaee   :  { %v1847_v30 = vpop.eup %1846 }
 0xaef   :  { %v1849_v31 = vpop.eup %1848  ;;  %v1112_v33 = vmul.f32 %v1847_v30, %v1096_v20 }
 0xaf0   :  { %v1111_v34 = vmul.f32 %v1849_v31, %v1095_v21 }
 0xaf1   :  { %v1118_v38 = vmul.f32 %v1578_v32, %v1112_v33 }
 0xaf2   :  { %v1117_v37 = vmul.f32 %v1578_v32, %v1111_v34 }
 0xaf3   :  { %v1124_v43 = vadd.f32 %v1579_v36, %v1118_v38 }
 0xaf4   :  { %v1123_v40 = vadd.f32 %v1579_v36, %v1117_v37 }
 0xaf6   :  { %1727 = vmatpush3.msra.mxu1 %v1123_v40 }
 0xaf7   :  { %1729 = vmatmul.mubr.msk.f32.vlgmr.msra.gmra.mrb[10].mxu1 %vm489_vm9, %v1126_v39  ;;  %1731 = vmatprep.subr.mxu1 %v1972_v49 }
 0xaf8   :  { %1732 = vmatpush3.msra.mxu1 %v1124_v43  ;;  %1733 = vmatprep.mubr.msk.f32.mxu1 %vm1973_vm8, %v1972_v49 }
 0xaf9   :  { %1803 = vmatprep.subr.bf16.mxu1 %v1976_v47 }
 0xafb   :  { %1734 = vmatmul.mubr.msk.f32.vlgmr.msra.gmra.mrb[12].mxu1 %vm489_vm9, %v1200_v45 }
 0xafc   :  { %1805 = vmatpush3.bf16.msra.mxu1 %v1804_v46  ;;  %1744 = vmatprep.mubr.msk.f32.mxu1 %vm1973_vm8, %v1972_v49 }
 0xafd   :  { %1806 = vmatprep.subr.bf16.mxu1 %v1976_v47 }
 0xb00   :  { %1808 = vmatpush3.bf16.msra.mxu1 %v1807_v52 }
 0xbca   :  { %v1196_v55 = vpop.f32.mrb[10].mxu1 }
 0xbcb   :  { %v1730_v56 = vpop.f32.mrb[11].mxu1 }
 0xbce   :  { %v1269_v57 = vpop.f32.mrb[12].mxu1 }
 0xbcf   :  { %v1274_v58 = vrot.slane %v1269_v57, 7  ;;  %v1735_v60 = vpop.f32.mrb[13].mxu1 }
 0xbd1   :  { %v1276_v61 = vsel %vm246_vm0, %v1196_v55, %v1274_v58  ;;  %vm1414_vm0 = vcmask 1024  }
 0xbd2   :  { %1745 = vmatmul.mubr.msk.f32.vlgmr.msra.gmra.mrb[14].mxu1 %vm272_vm7, %v1276_v61 }
 0xca5   :  { %v1355_v48 = vpop.f32.mrb[14].mxu1 }
 0xca6   :  { %v1356_v44 = vadd.f32 %v1582_v62, %v1355_v48  ;;  %v1746_v63 = vpop.f32.mrb[15].mxu1 }
 0xca8   :  { %1363 = vrot.lane.b32.xlu0 %v1356_v44, %s1977_s28  ;;  %1360 = vrot.lane.b32.xlu1 %v1356_v44, %s1978_s29 }
 0xccc   :  { %1393 = vmin.xlane.f32.xlu1 %v1392_v5 }
 0xd1a   :  { %v1361_v6 = vpop.permute.xlu1 %1360  ;;  %v1364_v7 = vpop.permute.xlu0 %1363 }
 0xd1b   :  { %v1367_v8 = vsel %vm1366_vm12, %v1361_v6, %v1364_v7 }
 0xd1c   :  { %v1369_v9 = vsel %vm1368_vm10, %v1367_v8, -inf }
 0xd1d   :  { %1370 = vmax.xlane.f32.xlu0 %v1369_v9 }
 0xd59   :  { %v1394_v11 = vpop.xlane.xlu1 %1393 }
 0xd5a   :  { %vm1395_vm13 = vcmp.eq.f32.partialorder %v1392_v5, %v1394_v11  ;;  %v1400_v20 = vcvt.f32.s32 %v1394_v11 }
 0xd5b   :  { %v1396_v13 = vsel %vm1395_vm13, %v1391_v12, inf }
 0xd5c   :  { %1397 = vmin.xlane.f32.xlu1 %v1396_v13  ;;  %v1401_v22 = vshll.u32 %v1400_v20, 16 }
 0xdaa   :  { %v1371_v59 = vpop.xlane.xlu0 %1370 }
 0xdab   :  { %v1372_v14 = vsub.f32 %v1367_v8, %v1371_v59 }
 0xdad   :  { %v1373_v15 = vmul.f32 1.442695, %v1372_v14 }
 0xdaf   :  { %1850 = vpow2.f32 %v1373_v15 }
 0xdb9   :  { %v1851_v16 = vpop.eup %1850 }
 0xdba   :  { %v1375_v17 = vsel %vm1368_vm10, %v1851_v16, 0.0 }
 0xdbb   :  { %1376 = vadd.xlane.f32.xlu0 %v1375_v17 }
 0xde9   :  { %v1398_v21 = vpop.xlane.xlu1 %1397 }
 0xdea   :  { %v1399_v23 = vcvt.f32.s32 %v1398_v21 }
 0xdec   :  { %v1402_v24 = vadd.s32 %v1401_v22, %v1399_v23 }
 0xdee   :  { %vm1403_vm14 = vcmp.eq.s32.totalorder %v1382_v1, %v1402_v24 }
 0xdef   :  { %v1584_v19 = vsel %vm1403_vm14, 1.0, %v1972_v49 }
 0xdf0   :  { %v1409_v18 = vmul.f32 %v1584_v19, %v1367_v8 }
 0xdf2   :  { %v1410_v25 = vsel %vm1368_vm10, %v1409_v18, 0.0 }
 0xdf3   :  { %1411 = vadd.xlane.f32.xlu1 %v1410_v25 }
 0xe48   :  { %v1377_v26 = vpop.xlane.xlu0 %1376 }
 0xe49   :  { %1852 = vrcp.f32 %v1377_v26 }
 0xe4a   :  { %1854 = vlog2.f32 %v1377_v26 }
 0xe53   :  { %v1853_v27 = vpop.eup %1852 }
 0xe54   :  { %v1379_v28 = vmul.f32 %v1853_v27, %v1851_v16  ;;  %v1855_v30 = vpop.eup %1854 }
 0xe55   :  { %v1407_v31 = vmul.f32 0.6931472, %v1855_v30 }
 0xe56   :  { %v1431_v29 = vsel %vm1430_vm15, %v1379_v28, 0.0 }
 0xe57   :  { %1432 = vst [vmem:[#allocation13] sm:$0x3] %v1431_v29  ;;  %v1408_v32 = vadd.f32 %v1407_v31, %v1371_v59 }
 0xe80   :  { %v1412_v33 = vpop.xlane.xlu1 %1411 }
 0xe81   :  { %v1413_v34 = vsub.f32 %v1408_v32, %v1412_v33 }
 0xe83   :  { %v1415_v35 = vsel %vm1414_vm0, %v1413_v34, 0.0 }
 0xe84   :  { %1416 = vadd.xlane.f32.xlu0 %v1415_v35 }
 0xe85   :  { %1933 = shalt.err (!%p1930_p0)
}
 0xe86   :  { %s1934_s11 = scalar_lea.hbm %s2230_s7, 32 }
 0xe87   :  { %p1935_p1 = scmp.ne.s32.totalorder %s2230_s7, %s1934_s11  ;;  %p1938_p2 = scmp.lt.u32.totalorder %s1934_s11, %s2230_s7 }
 0xe89   :  { %p1940_p3 = pnand %p1938_p2, %p1935_p1 }
 0xe8b   :  { %1943 = shalt.err (!%p1940_p3)
}
 0xe8c   :  { %1450 = dma.vmem_to_hbm [thread:$0]  %s1448_s30, 32, %s2230_s7, [#allocation4]  }
 0xe8d   :  { %s1944_s0 = scalar_lea.hbm %s2229_s6, 16 }
 0xe8e   :  { %p1945_p4 = scmp.ne.s32.totalorder %s2229_s6, %s1944_s0  ;;  %p1948_p5 = scmp.lt.u32.totalorder %s1944_s0, %s2229_s6 }
 0xe90   :  { %p1950_p6 = pnand %p1948_p5, %p1945_p4 }
 0xf11   :  { %v1417_v49 = vpop.xlane.xlu0 %1416 }
 0xf12   :  { %v1418_v36 = vrot.slane %v1417_v49, 4 }
 0xf14   :  { %v1419_v37 = vadd.f32 %v1418_v36, %v1417_v49 }
 0xf16   :  { %v1420_v38 = vrot.slane %v1419_v37, 2 }
 0xf18   :  { %v1421_v39 = vadd.f32 %v1420_v38, %v1419_v37 }
 0xf1a   :  { %v1422_v40 = vrot.slane %v1421_v39, 1 }
 0xf1c   :  { %v1423_v41 = vadd.f32 %v1422_v40, %v1421_v39 }
 0xf1e   :  { %1809 = vpush %v1423_v41 }
 0xf4f   :  { %s1810_s16 = spop %1809 }
 0xf50   :  { %s1427_s17 = smul.f32 0.5, %s1810_s16 }
 0xf52   :  { %1429 = sst [smem:[#allocation12]] %s1427_s17 }
 0xf53   :  { %1953 = shalt.err (!%p1950_p6)
}
 0xf54   :  { %s1980_s24 = smov [#allocation12]  }
 0xf55   :  { %1440 = dma.smem_to_hbm %s1980_s24, 16, %s2229_s6, [#allocation6]  }
 0xf56   :  { %1962 = dma.done.wait [#allocation6], 16  }
 0xf57   :  { %1963 = vsyncadd [#allocation6], 4294967280 }
 0xf58   :  { %1964 = dma.done.wait [#allocation4], 32  }
 0xf59   :  { %1965 = vsyncadd [#allocation4], 4294967264 }
 0xf5a   :  { %1457 = sfence }
 0xf5b   :  { %1458 = vsyncpa [#allocation3], 1 }
 0xf5c   :  { %1459 = vsyncpa [#allocation11], 1 }
 0xf5d   :  { %1460 = vsyncpa [#allocation4], 1 }
 0xf5e   :  { %1461 = vsyncpa [#allocation5], 1 }
 0xf5f   :  { %1462 = vsyncpa [#allocation6], 1 }
 0xf60   :  { %1463 = vsyncpa [#allocation7], 1 }

</bundles_post_ra>
